<compile_context>
chip_gen: v5e
topology: v5e:2x2
jax: 0.10.0
libtpu: 0.0.40
codegen_flags: <defaults>
</compile_context>

<pallas_src>
import jax
import jax.numpy as jnp
from jax.experimental import pallas as pl
from jax.experimental.pallas import tpu as pltpu


def _round_up(x, m):
    return (x + m - 1) // m * m


def _pad_gate_cols(w, H, Hp):
    """Pad (..., 3H) gate-blocked [r|z|n] arrays to (..., 3*Hp) with zeros per gate."""
    lead = w.shape[:-1]
    w3 = w.reshape(*lead, 3, H)
    w3 = jnp.pad(w3, [(0, 0)] * len(lead) + [(0, 0), (0, Hp - H)])
    return w3.reshape(*lead, 3 * Hp)


def _make_gru_fc_kernel(T, Bp, Hp):
    def kernel(x_ref, wih_ref, whh_ref, bih_ref, bhh_ref, wfc_ref, bfc_ref,
               out_ref, gi_ref):
        # ---- Phase 1: input projection for ALL timesteps in one big matmul ----
        gi_ref[...] = (
            jnp.dot(x_ref[...], wih_ref[...], preferred_element_type=jnp.float32)
            + bih_ref[...])

        whh = whh_ref[...]          # (Hp, 3Hp), time-invariant -> hoisted load
        bhh = bhh_ref[...]          # (1, 3Hp)

        # ---- Phase 2: sequential GRU recurrence, h carried in vregs ----
        def step(t, h):
            row0 = pl.multiple_of(t * Bp, Bp)            # sublane-aligned slice
            gi = gi_ref[pl.ds(row0, Bp), :]              # (Bp, 3Hp)
            gh = jnp.dot(h, whh, preferred_element_type=jnp.float32) + bhh
            # Gate order [r, z, n], 128-lane aligned slices (Hp % 128 == 0).
            r = jax.nn.sigmoid(gi[:, 0:Hp] + gh[:, 0:Hp])
            z = jax.nn.sigmoid(gi[:, Hp:2 * Hp] + gh[:, Hp:2 * Hp])
            n = jnp.tanh(gi[:, 2 * Hp:3 * Hp] + r * gh[:, 2 * Hp:3 * Hp])
            return (1.0 - z) * n + z * h

        h0 = jnp.zeros((Bp, Hp), jnp.float32)
        h_last = jax.lax.fori_loop(0, T, step, h0, unroll=True)

        # ---- Phase 3: fused final Linear on the last hidden state ----
        out = (jnp.dot(h_last, wfc_ref[...], preferred_element_type=jnp.float32)
               + bfc_ref[...])
        out_ref[...] = out.astype(out_ref.dtype)

    return kernel


def gru_model_forward(x, params):
    """x: (B, T, I) float32 (batch_first, like PyTorch). Returns (B, O)."""
    B, T, I = x.shape
    wih, whh, bih, bhh, wfc, bfc = params
    H = whh.shape[0]
    O = wfc.shape[1]

    # Pad to TPU vreg geometry (8 sublanes x 128 lanes).
    Bp = _round_up(B, 8)
    Hp = _round_up(H, 128)
    Op = _round_up(O, 128)

    # (B, T, I) -> (T, B, I) -> pad batch -> flatten to (T*Bp, I)
    x_tbi = jnp.transpose(x, (1, 0, 2))
    x_tbi = jnp.pad(x_tbi, ((0, 0), (0, Bp - B), (0, 0)))
    x2d = x_tbi.reshape(T * Bp, I)

    # Pad each gate block to Hp; pad hidden rows / fc dims with zeros.
    wih_p = _pad_gate_cols(wih, H, Hp)                              # (I, 3Hp)
    whh_p = jnp.pad(_pad_gate_cols(whh, H, Hp), ((0, Hp - H), (0, 0)))  # (Hp, 3Hp)
    bih_p = _pad_gate_cols(bih, H, Hp)                              # (1, 3Hp)
    bhh_p = _pad_gate_cols(bhh, H, Hp)                              # (1, 3Hp)
    wfc_p = jnp.pad(wfc, ((0, Hp - H), (0, Op - O)))                # (Hp, Op)
    bfc_p = jnp.pad(bfc, ((0, 0), (0, Op - O)))                     # (1, Op)

    grid_spec = pltpu.PrefetchScalarGridSpec(
        num_scalar_prefetch=0,
        grid=(1,),
        in_specs=[
            pl.BlockSpec((T * Bp, I), lambda i: (0, 0)),     # x (all timesteps)
            pl.BlockSpec((I, 3 * Hp), lambda i: (0, 0)),     # W_ih^T
            pl.BlockSpec((Hp, 3 * Hp), lambda i: (0, 0)),    # W_hh^T
            pl.BlockSpec((1, 3 * Hp), lambda i: (0, 0)),     # b_ih
            pl.BlockSpec((1, 3 * Hp), lambda i: (0, 0)),     # b_hh
            pl.BlockSpec((Hp, Op), lambda i: (0, 0)),        # W_fc^T
            pl.BlockSpec((1, Op), lambda i: (0, 0)),         # b_fc
        ],
        out_specs=pl.BlockSpec((Bp, Op), lambda i: (0, 0)),
        scratch_shapes=[pltpu.VMEM((T * Bp, 3 * Hp), jnp.float32)],  # gi_all
    )

    out_p = pl.pallas_call(
        _make_gru_fc_kernel(T, Bp, Hp),
        out_shape=jax.ShapeDtypeStruct((Bp, Op), jnp.float32),
        grid_spec=grid_spec,
        compiler_params=pltpu.CompilerParams(
            dimension_semantics=("arbitrary",)),
    )(x2d, wih_p, whh_p, bih_p, bhh_p, wfc_p, bfc_p)

    return out_p[:B, :O]


def init_params(key, input_size, hidden_size, output_size):
    """Deterministic init mirroring PyTorch shapes (stored pre-transposed)."""
    k = 1.0 / jnp.sqrt(hidden_size)
    keys = jax.random.split(key, 6)
    # PyTorch: weight_ih_l0 (3H, I) -> stored transposed (I, 3H) for x @ W
    wih = jax.random.uniform(keys[0], (input_size, 3 * hidden_size),
                             jnp.float32, -k, k)
    whh = jax.random.uniform(keys[1], (hidden_size, 3 * hidden_size),
                             jnp.float32, -k, k)
    bih = jax.random.uniform(keys[2], (1, 3 * hidden_size), jnp.float32, -k, k)
    bhh = jax.random.uniform(keys[3], (1, 3 * hidden_size), jnp.float32, -k, k)
    wfc = jax.random.uniform(keys[4], (hidden_size, output_size),
                             jnp.float32, -k, k)
    bfc = jax.random.uniform(keys[5], (1, output_size), jnp.float32, -k, k)
    return (wih, whh, bih, bhh, wfc, bfc)


def gru_model_reference(x, params):
    """Pure-JAX reference of the same GRU + Linear (for sanity checking)."""
    wih, whh, bih, bhh, wfc, bfc = params
    H = whh.shape[0]
    B, T, _ = x.shape

    def step(h, x_t):
        gi = x_t @ wih + bih
        gh = h @ whh + bhh
        r = jax.nn.sigmoid(gi[:, :H] + gh[:, :H])
        z = jax.nn.sigmoid(gi[:, H:2 * H] + gh[:, H:2 * H])
        n = jnp.tanh(gi[:, 2 * H:] + r * gh[:, 2 * H:])
        h_new = (1.0 - z) * n + z * h
        return h_new, None

    h0 = jnp.zeros((B, H), jnp.float32)
    h_last, _ = jax.lax.scan(step, h0, jnp.transpose(x, (1, 0, 2)))
    return h_last @ wfc + bfc


if __name__ == "__main__":
    B, T, I, H, O = 2, 8, 16, 32, 4  # batch, seq, input_size, hidden_size, output_size

    key = jax.random.PRNGKey(0)
    k_x, k_p = jax.random.split(key)
    x = jax.random.normal(k_x, (B, T, I), jnp.float32)
    params = init_params(k_p, I, H, O)

    out = gru_model_forward(x, params)
    out = jax.block_until_ready(out)

    ref = gru_model_reference(x, params)
    assert out.shape == (B, O)
    assert jnp.allclose(out, ref, atol=1e-5, rtol=1e-5), "mismatch vs reference"

    print("KERNEL_OK")
</pallas_src>

<mosaic_0001>
module attributes {stable_mosaic.version = 11 : i64} {
  func.func @kernel(%arg0: i32, %arg1: memref<64x16xf32, #tpu.memory_space<vmem>>, %arg2: memref<16x384xf32, #tpu.memory_space<vmem>>, %arg3: memref<128x384xf32, #tpu.memory_space<vmem>>, %arg4: memref<1x384xf32, #tpu.memory_space<vmem>>, %arg5: memref<1x384xf32, #tpu.memory_space<vmem>>, %arg6: memref<128x128xf32, #tpu.memory_space<vmem>>, %arg7: memref<1x128xf32, #tpu.memory_space<vmem>>, %arg8: memref<8x128xf32, #tpu.memory_space<vmem>>, %arg9: memref<64x384xf32, #tpu.memory_space<vmem>>) attributes {dimension_semantics = [#tpu.dimension_semantics<arbitrary>], iteration_bounds = array<i64: 1>, scalar_prefetch = 0 : i64, scratch_operands = 1 : i64, tpu.core_type = #tpu.core_type<tc>, window_params = [{pipeline_mode = #tpu.pipeline_mode<synchronous>, transform_indices = @transform_0, window_bounds = array<i64: 64, 16>}, {pipeline_mode = #tpu.pipeline_mode<synchronous>, transform_indices = @transform_1, window_bounds = array<i64: 16, 384>}, {pipeline_mode = #tpu.pipeline_mode<synchronous>, transform_indices = @transform_2, window_bounds = array<i64: 128, 384>}, {pipeline_mode = #tpu.pipeline_mode<synchronous>, transform_indices = @transform_3, window_bounds = array<i64: 1, 384>}, {pipeline_mode = #tpu.pipeline_mode<synchronous>, transform_indices = @transform_4, window_bounds = array<i64: 1, 384>}, {pipeline_mode = #tpu.pipeline_mode<synchronous>, transform_indices = @transform_5, window_bounds = array<i64: 128, 128>}, {pipeline_mode = #tpu.pipeline_mode<synchronous>, transform_indices = @transform_6, window_bounds = array<i64: 1, 128>}, {pipeline_mode = #tpu.pipeline_mode<synchronous>, transform_indices = @transform_7, window_bounds = array<i64: 8, 128>}]} {
    %c0 = arith.constant 0 : index
    %c0_0 = arith.constant 0 : index
    %0 = vector.load %arg1[%c0, %c0_0] : memref<64x16xf32, #tpu.memory_space<vmem>>, vector<64x16xf32>
    %c0_1 = arith.constant 0 : index
    %c0_2 = arith.constant 0 : index
    %1 = vector.load %arg2[%c0_1, %c0_2] : memref<16x384xf32, #tpu.memory_space<vmem>>, vector<16x384xf32>
    %cst = arith.constant dense<0.000000e+00> : vector<64x384xf32>
    %2 = tpu.matmul %0, %1, %cst {dimension_numbers = #tpu.dot_dimension_numbers<[1], [0], [0], [1], [0, 0, 1, 1], [], []>} : vector<64x16xf32>, vector<16x384xf32>, vector<64x384xf32> -> vector<64x384xf32>
    %c0_3 = arith.constant 0 : index
    %c0_4 = arith.constant 0 : index
    %3 = vector.load %arg4[%c0_3, %c0_4] : memref<1x384xf32, #tpu.memory_space<vmem>>, vector<1x384xf32>
    %4 = vector.broadcast %3 : vector<1x384xf32> to vector<64x384xf32>
    %5 = arith.addf %2, %4 : vector<64x384xf32>
    %c0_5 = arith.constant 0 : index
    %c0_6 = arith.constant 0 : index
    %6 = vector.load %arg9[%c0_5, %c0_6] : memref<64x384xf32, #tpu.memory_space<vmem>>, vector<64x384xf32>
    tpu.vector_store %arg9[%c0_5, %c0_6], %5 {strides = array<i32>} : memref<64x384xf32, #tpu.memory_space<vmem>>, vector<64x384xf32>,
    %c0_7 = arith.constant 0 : index
    %c0_8 = arith.constant 0 : index
    %7 = vector.load %arg3[%c0_7, %c0_8] : memref<128x384xf32, #tpu.memory_space<vmem>>, vector<128x384xf32>
    %c0_9 = arith.constant 0 : index
    %c0_10 = arith.constant 0 : index
    %8 = vector.load %arg5[%c0_9, %c0_10] : memref<1x384xf32, #tpu.memory_space<vmem>>, vector<1x384xf32>
    %cst_11 = arith.constant 0.000000e+00 : f32
    %9 = vector.broadcast %cst_11 : f32 to vector<8x128xf32>
    %c0_i32 = arith.constant 0 : i32
    %c8_i32 = arith.constant 8 : i32
    %10 = arith.muli %c0_i32, %c8_i32 : i32
    %11 = tpu.assume_multiple %10, 8 : i32
    %12 = arith.index_cast %11 : i32 to index
    %c0_12 = arith.constant 0 : index
    %13 = vector.load %arg9[%12, %c0_12] : memref<64x384xf32, #tpu.memory_space<vmem>>, vector<8x384xf32>
    %cst_13 = arith.constant dense<0.000000e+00> : vector<8x384xf32>
    %14 = tpu.matmul %9, %7, %cst_13 {dimension_numbers = #tpu.dot_dimension_numbers<[1], [0], [0], [1], [0, 0, 1, 1], [], []>} : vector<8x128xf32>, vector<128x384xf32>, vector<8x384xf32> -> vector<8x384xf32>
    %15 = vector.broadcast %8 : vector<1x384xf32> to vector<8x384xf32>
    %16 = arith.addf %14, %15 : vector<8x384xf32>
    %17 = vector.extract_strided_slice %13 {offsets = [0, 0], sizes = [8, 128], strides = [1, 1]} : vector<8x384xf32> to vector<8x128xf32>
    %18 = vector.extract_strided_slice %16 {offsets = [0, 0], sizes = [8, 128], strides = [1, 1]} : vector<8x384xf32> to vector<8x128xf32>
    %19 = arith.addf %17, %18 : vector<8x128xf32>
    %20 = arith.negf %19 : vector<8x128xf32>
    %21 = math.exp %20 : vector<8x128xf32>
    %cst_14 = arith.constant 1.000000e+00 : f32
    %22 = vector.broadcast %cst_14 : f32 to vector<8x128xf32>
    %23 = arith.addf %22, %21 : vector<8x128xf32>
    %24 = arith.divf %22, %23 : vector<8x128xf32>
    %25 = vector.extract_strided_slice %13 {offsets = [0, 128], sizes = [8, 128], strides = [1, 1]} : vector<8x384xf32> to vector<8x128xf32>
    %26 = vector.extract_strided_slice %16 {offsets = [0, 128], sizes = [8, 128], strides = [1, 1]} : vector<8x384xf32> to vector<8x128xf32>
    %27 = arith.addf %25, %26 : vector<8x128xf32>
    %28 = arith.negf %27 : vector<8x128xf32>
    %29 = math.exp %28 : vector<8x128xf32>
    %cst_15 = arith.constant 1.000000e+00 : f32
    %30 = vector.broadcast %cst_15 : f32 to vector<8x128xf32>
    %31 = arith.addf %30, %29 : vector<8x128xf32>
    %32 = arith.divf %30, %31 : vector<8x128xf32>
    %33 = vector.extract_strided_slice %13 {offsets = [0, 256], sizes = [8, 128], strides = [1, 1]} : vector<8x384xf32> to vector<8x128xf32>
    %34 = vector.extract_strided_slice %16 {offsets = [0, 256], sizes = [8, 128], strides = [1, 1]} : vector<8x384xf32> to vector<8x128xf32>
    %35 = arith.mulf %24, %34 : vector<8x128xf32>
    %36 = arith.addf %33, %35 : vector<8x128xf32>
    %37 = math.tanh %36 : vector<8x128xf32>
    %cst_16 = arith.constant 1.000000e+00 : f32
    %38 = vector.broadcast %cst_16 : f32 to vector<8x128xf32>
    %39 = arith.subf %38, %32 : vector<8x128xf32>
    %40 = arith.mulf %39, %37 : vector<8x128xf32>
    %41 = arith.mulf %32, %9 : vector<8x128xf32>
    %42 = arith.addf %40, %41 : vector<8x128xf32>
    %c1_i32 = arith.constant 1 : i32
    %c8_i32_17 = arith.constant 8 : i32
    %43 = arith.muli %c1_i32, %c8_i32_17 : i32
    %44 = tpu.assume_multiple %43, 8 : i32
    %45 = arith.index_cast %44 : i32 to index
    %c0_18 = arith.constant 0 : index
    %46 = vector.load %arg9[%45, %c0_18] : memref<64x384xf32, #tpu.memory_space<vmem>>, vector<8x384xf32>
    %cst_19 = arith.constant dense<0.000000e+00> : vector<8x384xf32>
    %47 = tpu.matmul %42, %7, %cst_19 {dimension_numbers = #tpu.dot_dimension_numbers<[1], [0], [0], [1], [0, 0, 1, 1], [], []>} : vector<8x128xf32>, vector<128x384xf32>, vector<8x384xf32> -> vector<8x384xf32>
    %48 = vector.broadcast %8 : vector<1x384xf32> to vector<8x384xf32>
    %49 = arith.addf %47, %48 : vector<8x384xf32>
    %50 = vector.extract_strided_slice %46 {offsets = [0, 0], sizes = [8, 128], strides = [1, 1]} : vector<8x384xf32> to vector<8x128xf32>
    %51 = vector.extract_strided_slice %49 {offsets = [0, 0], sizes = [8, 128], strides = [1, 1]} : vector<8x384xf32> to vector<8x128xf32>
    %52 = arith.addf %50, %51 : vector<8x128xf32>
    %53 = arith.negf %52 : vector<8x128xf32>
    %54 = math.exp %53 : vector<8x128xf32>
    %cst_20 = arith.constant 1.000000e+00 : f32
    %55 = vector.broadcast %cst_20 : f32 to vector<8x128xf32>
    %56 = arith.addf %55, %54 : vector<8x128xf32>
    %57 = arith.divf %55, %56 : vector<8x128xf32>
    %58 = vector.extract_strided_slice %46 {offsets = [0, 128], sizes = [8, 128], strides = [1, 1]} : vector<8x384xf32> to vector<8x128xf32>
    %59 = vector.extract_strided_slice %49 {offsets = [0, 128], sizes = [8, 128], strides = [1, 1]} : vector<8x384xf32> to vector<8x128xf32>
    %60 = arith.addf %58, %59 : vector<8x128xf32>
    %61 = arith.negf %60 : vector<8x128xf32>
    %62 = math.exp %61 : vector<8x128xf32>
    %cst_21 = arith.constant 1.000000e+00 : f32
    %63 = vector.broadcast %cst_21 : f32 to vector<8x128xf32>
    %64 = arith.addf %63, %62 : vector<8x128xf32>
    %65 = arith.divf %63, %64 : vector<8x128xf32>
    %66 = vector.extract_strided_slice %46 {offsets = [0, 256], sizes = [8, 128], strides = [1, 1]} : vector<8x384xf32> to vector<8x128xf32>
    %67 = vector.extract_strided_slice %49 {offsets = [0, 256], sizes = [8, 128], strides = [1, 1]} : vector<8x384xf32> to vector<8x128xf32>
    %68 = arith.mulf %57, %67 : vector<8x128xf32>
    %69 = arith.addf %66, %68 : vector<8x128xf32>
    %70 = math.tanh %69 : vector<8x128xf32>
    %cst_22 = arith.constant 1.000000e+00 : f32
    %71 = vector.broadcast %cst_22 : f32 to vector<8x128xf32>
    %72 = arith.subf %71, %65 : vector<8x128xf32>
    %73 = arith.mulf %72, %70 : vector<8x128xf32>
    %74 = arith.mulf %65, %42 : vector<8x128xf32>
    %75 = arith.addf %73, %74 : vector<8x128xf32>
    %c2_i32 = arith.constant 2 : i32
    %c8_i32_23 = arith.constant 8 : i32
    %76 = arith.muli %c2_i32, %c8_i32_23 : i32
    %77 = tpu.assume_multiple %76, 8 : i32
    %78 = arith.index_cast %77 : i32 to index
    %c0_24 = arith.constant 0 : index
    %79 = vector.load %arg9[%78, %c0_24] : memref<64x384xf32, #tpu.memory_space<vmem>>, vector<8x384xf32>
    %cst_25 = arith.constant dense<0.000000e+00> : vector<8x384xf32>
    %80 = tpu.matmul %75, %7, %cst_25 {dimension_numbers = #tpu.dot_dimension_numbers<[1], [0], [0], [1], [0, 0, 1, 1], [], []>} : vector<8x128xf32>, vector<128x384xf32>, vector<8x384xf32> -> vector<8x384xf32>
    %81 = vector.broadcast %8 : vector<1x384xf32> to vector<8x384xf32>
    %82 = arith.addf %80, %81 : vector<8x384xf32>
    %83 = vector.extract_strided_slice %79 {offsets = [0, 0], sizes = [8, 128], strides = [1, 1]} : vector<8x384xf32> to vector<8x128xf32>
    %84 = vector.extract_strided_slice %82 {offsets = [0, 0], sizes = [8, 128], strides = [1, 1]} : vector<8x384xf32> to vector<8x128xf32>
    %85 = arith.addf %83, %84 : vector<8x128xf32>
    %86 = arith.negf %85 : vector<8x128xf32>
    %87 = math.exp %86 : vector<8x128xf32>
    %cst_26 = arith.constant 1.000000e+00 : f32
    %88 = vector.broadcast %cst_26 : f32 to vector<8x128xf32>
    %89 = arith.addf %88, %87 : vector<8x128xf32>
    %90 = arith.divf %88, %89 : vector<8x128xf32>
    %91 = vector.extract_strided_slice %79 {offsets = [0, 128], sizes = [8, 128], strides = [1, 1]} : vector<8x384xf32> to vector<8x128xf32>
    %92 = vector.extract_strided_slice %82 {offsets = [0, 128], sizes = [8, 128], strides = [1, 1]} : vector<8x384xf32> to vector<8x128xf32>
    %93 = arith.addf %91, %92 : vector<8x128xf32>
    %94 = arith.negf %93 : vector<8x128xf32>
    %95 = math.exp %94 : vector<8x128xf32>
    %cst_27 = arith.constant 1.000000e+00 : f32
    %96 = vector.broadcast %cst_27 : f32 to vector<8x128xf32>
    %97 = arith.addf %96, %95 : vector<8x128xf32>
    %98 = arith.divf %96, %97 : vector<8x128xf32>
    %99 = vector.extract_strided_slice %79 {offsets = [0, 256], sizes = [8, 128], strides = [1, 1]} : vector<8x384xf32> to vector<8x128xf32>
    %100 = vector.extract_strided_slice %82 {offsets = [0, 256], sizes = [8, 128], strides = [1, 1]} : vector<8x384xf32> to vector<8x128xf32>
    %101 = arith.mulf %90, %100 : vector<8x128xf32>
    %102 = arith.addf %99, %101 : vector<8x128xf32>
    %103 = math.tanh %102 : vector<8x128xf32>
    %cst_28 = arith.constant 1.000000e+00 : f32
    %104 = vector.broadcast %cst_28 : f32 to vector<8x128xf32>
    %105 = arith.subf %104, %98 : vector<8x128xf32>
    %106 = arith.mulf %105, %103 : vector<8x128xf32>
    %107 = arith.mulf %98, %75 : vector<8x128xf32>
    %108 = arith.addf %106, %107 : vector<8x128xf32>
    %c3_i32 = arith.constant 3 : i32
    %c8_i32_29 = arith.constant 8 : i32
    %109 = arith.muli %c3_i32, %c8_i32_29 : i32
    %110 = tpu.assume_multiple %109, 8 : i32
    %111 = arith.index_cast %110 : i32 to index
    %c0_30 = arith.constant 0 : index
    %112 = vector.load %arg9[%111, %c0_30] : memref<64x384xf32, #tpu.memory_space<vmem>>, vector<8x384xf32>
    %cst_31 = arith.constant dense<0.000000e+00> : vector<8x384xf32>
    %113 = tpu.matmul %108, %7, %cst_31 {dimension_numbers = #tpu.dot_dimension_numbers<[1], [0], [0], [1], [0, 0, 1, 1], [], []>} : vector<8x128xf32>, vector<128x384xf32>, vector<8x384xf32> -> vector<8x384xf32>
    %114 = vector.broadcast %8 : vector<1x384xf32> to vector<8x384xf32>
    %115 = arith.addf %113, %114 : vector<8x384xf32>
    %116 = vector.extract_strided_slice %112 {offsets = [0, 0], sizes = [8, 128], strides = [1, 1]} : vector<8x384xf32> to vector<8x128xf32>
    %117 = vector.extract_strided_slice %115 {offsets = [0, 0], sizes = [8, 128], strides = [1, 1]} : vector<8x384xf32> to vector<8x128xf32>
    %118 = arith.addf %116, %117 : vector<8x128xf32>
    %119 = arith.negf %118 : vector<8x128xf32>
    %120 = math.exp %119 : vector<8x128xf32>
    %cst_32 = arith.constant 1.000000e+00 : f32
    %121 = vector.broadcast %cst_32 : f32 to vector<8x128xf32>
    %122 = arith.addf %121, %120 : vector<8x128xf32>
    %123 = arith.divf %121, %122 : vector<8x128xf32>
    %124 = vector.extract_strided_slice %112 {offsets = [0, 128], sizes = [8, 128], strides = [1, 1]} : vector<8x384xf32> to vector<8x128xf32>
    %125 = vector.extract_strided_slice %115 {offsets = [0, 128], sizes = [8, 128], strides = [1, 1]} : vector<8x384xf32> to vector<8x128xf32>
    %126 = arith.addf %124, %125 : vector<8x128xf32>
    %127 = arith.negf %126 : vector<8x128xf32>
    %128 = math.exp %127 : vector<8x128xf32>
    %cst_33 = arith.constant 1.000000e+00 : f32
    %129 = vector.broadcast %cst_33 : f32 to vector<8x128xf32>
    %130 = arith.addf %129, %128 : vector<8x128xf32>
    %131 = arith.divf %129, %130 : vector<8x128xf32>
    %132 = vector.extract_strided_slice %112 {offsets = [0, 256], sizes = [8, 128], strides = [1, 1]} : vector<8x384xf32> to vector<8x128xf32>
    %133 = vector.extract_strided_slice %115 {offsets = [0, 256], sizes = [8, 128], strides = [1, 1]} : vector<8x384xf32> to vector<8x128xf32>
    %134 = arith.mulf %123, %133 : vector<8x128xf32>
    %135 = arith.addf %132, %134 : vector<8x128xf32>
    %136 = math.tanh %135 : vector<8x128xf32>
    %cst_34 = arith.constant 1.000000e+00 : f32
    %137 = vector.broadcast %cst_34 : f32 to vector<8x128xf32>
    %138 = arith.subf %137, %131 : vector<8x128xf32>
    %139 = arith.mulf %138, %136 : vector<8x128xf32>
    %140 = arith.mulf %131, %108 : vector<8x128xf32>
    %141 = arith.addf %139, %140 : vector<8x128xf32>
    %c4_i32 = arith.constant 4 : i32
    %c8_i32_35 = arith.constant 8 : i32
    %142 = arith.muli %c4_i32, %c8_i32_35 : i32
    %143 = tpu.assume_multiple %142, 8 : i32
    %144 = arith.index_cast %143 : i32 to index
    %c0_36 = arith.constant 0 : index
    %145 = vector.load %arg9[%144, %c0_36] : memref<64x384xf32, #tpu.memory_space<vmem>>, vector<8x384xf32>
    %cst_37 = arith.constant dense<0.000000e+00> : vector<8x384xf32>
    %146 = tpu.matmul %141, %7, %cst_37 {dimension_numbers = #tpu.dot_dimension_numbers<[1], [0], [0], [1], [0, 0, 1, 1], [], []>} : vector<8x128xf32>, vector<128x384xf32>, vector<8x384xf32> -> vector<8x384xf32>
    %147 = vector.broadcast %8 : vector<1x384xf32> to vector<8x384xf32>
    %148 = arith.addf %146, %147 : vector<8x384xf32>
    %149 = vector.extract_strided_slice %145 {offsets = [0, 0], sizes = [8, 128], strides = [1, 1]} : vector<8x384xf32> to vector<8x128xf32>
    %150 = vector.extract_strided_slice %148 {offsets = [0, 0], sizes = [8, 128], strides = [1, 1]} : vector<8x384xf32> to vector<8x128xf32>
    %151 = arith.addf %149, %150 : vector<8x128xf32>
    %152 = arith.negf %151 : vector<8x128xf32>
    %153 = math.exp %152 : vector<8x128xf32>
    %cst_38 = arith.constant 1.000000e+00 : f32
    %154 = vector.broadcast %cst_38 : f32 to vector<8x128xf32>
    %155 = arith.addf %154, %153 : vector<8x128xf32>
    %156 = arith.divf %154, %155 : vector<8x128xf32>
    %157 = vector.extract_strided_slice %145 {offsets = [0, 128], sizes = [8, 128], strides = [1, 1]} : vector<8x384xf32> to vector<8x128xf32>
    %158 = vector.extract_strided_slice %148 {offsets = [0, 128], sizes = [8, 128], strides = [1, 1]} : vector<8x384xf32> to vector<8x128xf32>
    %159 = arith.addf %157, %158 : vector<8x128xf32>
    %160 = arith.negf %159 : vector<8x128xf32>
    %161 = math.exp %160 : vector<8x128xf32>
    %cst_39 = arith.constant 1.000000e+00 : f32
    %162 = vector.broadcast %cst_39 : f32 to vector<8x128xf32>
    %163 = arith.addf %162, %161 : vector<8x128xf32>
    %164 = arith.divf %162, %163 : vector<8x128xf32>
    %165 = vector.extract_strided_slice %145 {offsets = [0, 256], sizes = [8, 128], strides = [1, 1]} : vector<8x384xf32> to vector<8x128xf32>
    %166 = vector.extract_strided_slice %148 {offsets = [0, 256], sizes = [8, 128], strides = [1, 1]} : vector<8x384xf32> to vector<8x128xf32>
    %167 = arith.mulf %156, %166 : vector<8x128xf32>
    %168 = arith.addf %165, %167 : vector<8x128xf32>
    %169 = math.tanh %168 : vector<8x128xf32>
    %cst_40 = arith.constant 1.000000e+00 : f32
    %170 = vector.broadcast %cst_40 : f32 to vector<8x128xf32>
    %171 = arith.subf %170, %164 : vector<8x128xf32>
    %172 = arith.mulf %171, %169 : vector<8x128xf32>
    %173 = arith.mulf %164, %141 : vector<8x128xf32>
    %174 = arith.addf %172, %173 : vector<8x128xf32>
    %c5_i32 = arith.constant 5 : i32
    %c8_i32_41 = arith.constant 8 : i32
    %175 = arith.muli %c5_i32, %c8_i32_41 : i32
    %176 = tpu.assume_multiple %175, 8 : i32
    %177 = arith.index_cast %176 : i32 to index
    %c0_42 = arith.constant 0 : index
    %178 = vector.load %arg9[%177, %c0_42] : memref<64x384xf32, #tpu.memory_space<vmem>>, vector<8x384xf32>
    %cst_43 = arith.constant dense<0.000000e+00> : vector<8x384xf32>
    %179 = tpu.matmul %174, %7, %cst_43 {dimension_numbers = #tpu.dot_dimension_numbers<[1], [0], [0], [1], [0, 0, 1, 1], [], []>} : vector<8x128xf32>, vector<128x384xf32>, vector<8x384xf32> -> vector<8x384xf32>
    %180 = vector.broadcast %8 : vector<1x384xf32> to vector<8x384xf32>
    %181 = arith.addf %179, %180 : vector<8x384xf32>
    %182 = vector.extract_strided_slice %178 {offsets = [0, 0], sizes = [8, 128], strides = [1, 1]} : vector<8x384xf32> to vector<8x128xf32>
    %183 = vector.extract_strided_slice %181 {offsets = [0, 0], sizes = [8, 128], strides = [1, 1]} : vector<8x384xf32> to vector<8x128xf32>
    %184 = arith.addf %182, %183 : vector<8x128xf32>
    %185 = arith.negf %184 : vector<8x128xf32>
    %186 = math.exp %185 : vector<8x128xf32>
    %cst_44 = arith.constant 1.000000e+00 : f32
    %187 = vector.broadcast %cst_44 : f32 to vector<8x128xf32>
    %188 = arith.addf %187, %186 : vector<8x128xf32>
    %189 = arith.divf %187, %188 : vector<8x128xf32>
    %190 = vector.extract_strided_slice %178 {offsets = [0, 128], sizes = [8, 128], strides = [1, 1]} : vector<8x384xf32> to vector<8x128xf32>
    %191 = vector.extract_strided_slice %181 {offsets = [0, 128], sizes = [8, 128], strides = [1, 1]} : vector<8x384xf32> to vector<8x128xf32>
    %192 = arith.addf %190, %191 : vector<8x128xf32>
    %193 = arith.negf %192 : vector<8x128xf32>
    %194 = math.exp %193 : vector<8x128xf32>
    %cst_45 = arith.constant 1.000000e+00 : f32
    %195 = vector.broadcast %cst_45 : f32 to vector<8x128xf32>
    %196 = arith.addf %195, %194 : vector<8x128xf32>
    %197 = arith.divf %195, %196 : vector<8x128xf32>
    %198 = vector.extract_strided_slice %178 {offsets = [0, 256], sizes = [8, 128], strides = [1, 1]} : vector<8x384xf32> to vector<8x128xf32>
    %199 = vector.extract_strided_slice %181 {offsets = [0, 256], sizes = [8, 128], strides = [1, 1]} : vector<8x384xf32> to vector<8x128xf32>
    %200 = arith.mulf %189, %199 : vector<8x128xf32>
    %201 = arith.addf %198, %200 : vector<8x128xf32>
    %202 = math.tanh %201 : vector<8x128xf32>
    %cst_46 = arith.constant 1.000000e+00 : f32
    %203 = vector.broadcast %cst_46 : f32 to vector<8x128xf32>
    %204 = arith.subf %203, %197 : vector<8x128xf32>
    %205 = arith.mulf %204, %202 : vector<8x128xf32>
    %206 = arith.mulf %197, %174 : vector<8x128xf32>
    %207 = arith.addf %205, %206 : vector<8x128xf32>
    %c6_i32 = arith.constant 6 : i32
    %c8_i32_47 = arith.constant 8 : i32
    %208 = arith.muli %c6_i32, %c8_i32_47 : i32
    %209 = tpu.assume_multiple %208, 8 : i32
    %210 = arith.index_cast %209 : i32 to index
    %c0_48 = arith.constant 0 : index
    %211 = vector.load %arg9[%210, %c0_48] : memref<64x384xf32, #tpu.memory_space<vmem>>, vector<8x384xf32>
    %cst_49 = arith.constant dense<0.000000e+00> : vector<8x384xf32>
    %212 = tpu.matmul %207, %7, %cst_49 {dimension_numbers = #tpu.dot_dimension_numbers<[1], [0], [0], [1], [0, 0, 1, 1], [], []>} : vector<8x128xf32>, vector<128x384xf32>, vector<8x384xf32> -> vector<8x384xf32>
    %213 = vector.broadcast %8 : vector<1x384xf32> to vector<8x384xf32>
    %214 = arith.addf %212, %213 : vector<8x384xf32>
    %215 = vector.extract_strided_slice %211 {offsets = [0, 0], sizes = [8, 128], strides = [1, 1]} : vector<8x384xf32> to vector<8x128xf32>
    %216 = vector.extract_strided_slice %214 {offsets = [0, 0], sizes = [8, 128], strides = [1, 1]} : vector<8x384xf32> to vector<8x128xf32>
    %217 = arith.addf %215, %216 : vector<8x128xf32>
    %218 = arith.negf %217 : vector<8x128xf32>
    %219 = math.exp %218 : vector<8x128xf32>
    %cst_50 = arith.constant 1.000000e+00 : f32
    %220 = vector.broadcast %cst_50 : f32 to vector<8x128xf32>
    %221 = arith.addf %220, %219 : vector<8x128xf32>
    %222 = arith.divf %220, %221 : vector<8x128xf32>
    %223 = vector.extract_strided_slice %211 {offsets = [0, 128], sizes = [8, 128], strides = [1, 1]} : vector<8x384xf32> to vector<8x128xf32>
    %224 = vector.extract_strided_slice %214 {offsets = [0, 128], sizes = [8, 128], strides = [1, 1]} : vector<8x384xf32> to vector<8x128xf32>
    %225 = arith.addf %223, %224 : vector<8x128xf32>
    %226 = arith.negf %225 : vector<8x128xf32>
    %227 = math.exp %226 : vector<8x128xf32>
    %cst_51 = arith.constant 1.000000e+00 : f32
    %228 = vector.broadcast %cst_51 : f32 to vector<8x128xf32>
    %229 = arith.addf %228, %227 : vector<8x128xf32>
    %230 = arith.divf %228, %229 : vector<8x128xf32>
    %231 = vector.extract_strided_slice %211 {offsets = [0, 256], sizes = [8, 128], strides = [1, 1]} : vector<8x384xf32> to vector<8x128xf32>
    %232 = vector.extract_strided_slice %214 {offsets = [0, 256], sizes = [8, 128], strides = [1, 1]} : vector<8x384xf32> to vector<8x128xf32>
    %233 = arith.mulf %222, %232 : vector<8x128xf32>
    %234 = arith.addf %231, %233 : vector<8x128xf32>
    %235 = math.tanh %234 : vector<8x128xf32>
    %cst_52 = arith.constant 1.000000e+00 : f32
    %236 = vector.broadcast %cst_52 : f32 to vector<8x128xf32>
    %237 = arith.subf %236, %230 : vector<8x128xf32>
    %238 = arith.mulf %237, %235 : vector<8x128xf32>
    %239 = arith.mulf %230, %207 : vector<8x128xf32>
    %240 = arith.addf %238, %239 : vector<8x128xf32>
    %c7_i32 = arith.constant 7 : i32
    %c8_i32_53 = arith.constant 8 : i32
    %241 = arith.muli %c7_i32, %c8_i32_53 : i32
    %242 = tpu.assume_multiple %241, 8 : i32
    %243 = arith.index_cast %242 : i32 to index
    %c0_54 = arith.constant 0 : index
    %244 = vector.load %arg9[%243, %c0_54] : memref<64x384xf32, #tpu.memory_space<vmem>>, vector<8x384xf32>
    %cst_55 = arith.constant dense<0.000000e+00> : vector<8x384xf32>
    %245 = tpu.matmul %240, %7, %cst_55 {dimension_numbers = #tpu.dot_dimension_numbers<[1], [0], [0], [1], [0, 0, 1, 1], [], []>} : vector<8x128xf32>, vector<128x384xf32>, vector<8x384xf32> -> vector<8x384xf32>
    %246 = vector.broadcast %8 : vector<1x384xf32> to vector<8x384xf32>
    %247 = arith.addf %245, %246 : vector<8x384xf32>
    %248 = vector.extract_strided_slice %244 {offsets = [0, 0], sizes = [8, 128], strides = [1, 1]} : vector<8x384xf32> to vector<8x128xf32>
    %249 = vector.extract_strided_slice %247 {offsets = [0, 0], sizes = [8, 128], strides = [1, 1]} : vector<8x384xf32> to vector<8x128xf32>
    %250 = arith.addf %248, %249 : vector<8x128xf32>
    %251 = arith.negf %250 : vector<8x128xf32>
    %252 = math.exp %251 : vector<8x128xf32>
    %cst_56 = arith.constant 1.000000e+00 : f32
    %253 = vector.broadcast %cst_56 : f32 to vector<8x128xf32>
    %254 = arith.addf %253, %252 : vector<8x128xf32>
    %255 = arith.divf %253, %254 : vector<8x128xf32>
    %256 = vector.extract_strided_slice %244 {offsets = [0, 128], sizes = [8, 128], strides = [1, 1]} : vector<8x384xf32> to vector<8x128xf32>
    %257 = vector.extract_strided_slice %247 {offsets = [0, 128], sizes = [8, 128], strides = [1, 1]} : vector<8x384xf32> to vector<8x128xf32>
    %258 = arith.addf %256, %257 : vector<8x128xf32>
    %259 = arith.negf %258 : vector<8x128xf32>
    %260 = math.exp %259 : vector<8x128xf32>
    %cst_57 = arith.constant 1.000000e+00 : f32
    %261 = vector.broadcast %cst_57 : f32 to vector<8x128xf32>
    %262 = arith.addf %261, %260 : vector<8x128xf32>
    %263 = arith.divf %261, %262 : vector<8x128xf32>
    %264 = vector.extract_strided_slice %244 {offsets = [0, 256], sizes = [8, 128], strides = [1, 1]} : vector<8x384xf32> to vector<8x128xf32>
    %265 = vector.extract_strided_slice %247 {offsets = [0, 256], sizes = [8, 128], strides = [1, 1]} : vector<8x384xf32> to vector<8x128xf32>
    %266 = arith.mulf %255, %265 : vector<8x128xf32>
    %267 = arith.addf %264, %266 : vector<8x128xf32>
    %268 = math.tanh %267 : vector<8x128xf32>
    %cst_58 = arith.constant 1.000000e+00 : f32
    %269 = vector.broadcast %cst_58 : f32 to vector<8x128xf32>
    %270 = arith.subf %269, %263 : vector<8x128xf32>
    %271 = arith.mulf %270, %268 : vector<8x128xf32>
    %272 = arith.mulf %263, %240 : vector<8x128xf32>
    %273 = arith.addf %271, %272 : vector<8x128xf32>
    %c8_i32_59 = arith.constant 8 : i32
    %c0_60 = arith.constant 0 : index
    %c0_61 = arith.constant 0 : index
    %274 = vector.load %arg6[%c0_60, %c0_61] : memref<128x128xf32, #tpu.memory_space<vmem>>, vector<128x128xf32>
    %cst_62 = arith.constant dense<0.000000e+00> : vector<8x128xf32>
    %275 = tpu.matmul %273, %274, %cst_62 {dimension_numbers = #tpu.dot_dimension_numbers<[1], [0], [0], [1], [0, 0, 1, 1], [], []>} : vector<8x128xf32>, vector<128x128xf32>, vector<8x128xf32> -> vector<8x128xf32>
    %c0_63 = arith.constant 0 : index
    %c0_64 = arith.constant 0 : index
    %276 = vector.load %arg7[%c0_63, %c0_64] : memref<1x128xf32, #tpu.memory_space<vmem>>, vector<1x128xf32>
    %277 = vector.broadcast %276 : vector<1x128xf32> to vector<8x128xf32>
    %278 = arith.addf %275, %277 : vector<8x128xf32>
    %c0_65 = arith.constant 0 : index
    %c0_66 = arith.constant 0 : index
    %279 = vector.load %arg8[%c0_65, %c0_66] : memref<8x128xf32, #tpu.memory_space<vmem>>, vector<8x128xf32>
    tpu.vector_store %arg8[%c0_65, %c0_66], %278 {strides = array<i32>} : memref<8x128xf32, #tpu.memory_space<vmem>>, vector<8x128xf32>,
    return
  }
  func.func @transform_0(%arg0: i32) -> (i32, i32) {
    %c0_i32 = arith.constant 0 : i32
    %c0_i32_0 = arith.constant 0 : i32
    %c0_i32_1 = arith.constant 0 : i32
    return %c0_i32, %c0_i32_0 : i32, i32
  }
  func.func @transform_1(%arg0: i32) -> (i32, i32) {
    %c0_i32 = arith.constant 0 : i32
    %c0_i32_0 = arith.constant 0 : i32
    %c0_i32_1 = arith.constant 0 : i32
    return %c0_i32, %c0_i32_0 : i32, i32
  }
  func.func @transform_2(%arg0: i32) -> (i32, i32) {
    %c0_i32 = arith.constant 0 : i32
    %c0_i32_0 = arith.constant 0 : i32
    %c0_i32_1 = arith.constant 0 : i32
    return %c0_i32, %c0_i32_0 : i32, i32
  }
  func.func @transform_3(%arg0: i32) -> (i32, i32) {
    %c0_i32 = arith.constant 0 : i32
    %c0_i32_0 = arith.constant 0 : i32
    %c0_i32_1 = arith.constant 0 : i32
    return %c0_i32, %c0_i32_0 : i32, i32
  }
  func.func @transform_4(%arg0: i32) -> (i32, i32) {
    %c0_i32 = arith.constant 0 : i32
    %c0_i32_0 = arith.constant 0 : i32
    %c0_i32_1 = arith.constant 0 : i32
    return %c0_i32, %c0_i32_0 : i32, i32
  }
  func.func @transform_5(%arg0: i32) -> (i32, i32) {
    %c0_i32 = arith.constant 0 : i32
    %c0_i32_0 = arith.constant 0 : i32
    %c0_i32_1 = arith.constant 0 : i32
    return %c0_i32, %c0_i32_0 : i32, i32
  }
  func.func @transform_6(%arg0: i32) -> (i32, i32) {
    %c0_i32 = arith.constant 0 : i32
    %c0_i32_0 = arith.constant 0 : i32
    %c0_i32_1 = arith.constant 0 : i32
    return %c0_i32, %c0_i32_0 : i32, i32
  }
  func.func @transform_7(%arg0: i32) -> (i32, i32) {
    %c0_i32 = arith.constant 0 : i32
    %c0_i32_0 = arith.constant 0 : i32
    %c0_i32_1 = arith.constant 0 : i32
    return %c0_i32, %c0_i32_0 : i32, i32
  }
}

</mosaic_0001>

<bundles_post_ra>
// kernel: tpu_custom_call.1
= control target key start
LH: loop header
LB: loop body
LE: loop exit
PB: predicated region body
PF: predicated region fallthrough
CT: control target
= control target key end

     0   :  { %12 = vsyncpa [#allocation4], 0  ;;  %s2386_s0 = inlined_call_operand.vmem [shape: f32[64,16], index: 0, kind: input, shape index: {}]   ;;  %s2387_s1 = inlined_call_operand.vmem [shape: f32[16,384], index: 1, kind: input, shape index: {}]   ;;  %s2388_s2 = inlined_call_operand.hbm [shape: f32[128,384], index: 2, kind: input, shape index: {}]   ;;  %s2389_s3 = inlined_call_operand.vmem [shape: f32[1,384], index: 3, kind: input, shape index: {}]   ;;  %s2390_s4 = inlined_call_operand.vmem [shape: f32[1,384], index: 4, kind: input, shape index: {}]   ;;  %s2391_s5 = inlined_call_operand.hbm [shape: f32[128,128], index: 5, kind: input, shape index: {}]   ;;  %s2392_s6 = inlined_call_operand.vmem [shape: f32[1,128], index: 6, kind: input, shape index: {}]   ;;  %s2393_s7 = inlined_call_operand.hbm [shape: f32[8,128], index: 7, kind: output, shape index: {}]  }
   0x1   :  { %13 = vsyncpa [#allocation7], 0 }
   0x2   :  { %14 = vsyncpa [#allocation5], 0  ;;  %s23_s26 = sshll.u32 %s2388_s2, 4  ;;  %s1534_s27 = smov [#allocation3]   ;;  %s24_s26 = int_to_ptr.hbm [resolvable:$true] %s23_s26 }
   0x3   :  { %s25_s28 = sshll.u32 %s1534_s27, 4  ;;  %s40_s8 = sshll.u32 %s2391_s5, 4  ;;  %s26_s28 = int_to_ptr.vmem [resolvable:$true] %s25_s28  ;;  %s41_s8 = int_to_ptr.hbm [resolvable:$true] %s40_s8 }
   0x4   :  { %s1535_s9 = smov 384   ;;  %s1536_s10 = smov 24  }
   0x5   :  { %31 = dma.hbm_to_vmem [thread:$0]  %s24_s26, 6144, %s26_s28, [#allocation4], %s1535_s9, %s1535_s9, %s1536_s10  }
   0x6   :  { %s1537_s11 = smov [#allocation6]   ;;  %s1538_s13 = smov 128  }
   0x7   :  { %s42_s12 = sshll.u32 %s1537_s11, 4  ;;  %s1539_s14 = smov 8   ;;  %s43_s12 = int_to_ptr.vmem [resolvable:$true] %s42_s12 }
   0x8   :  { %48 = dma.hbm_to_vmem [thread:$0]  %s41_s8, 2048, %s43_s12, [#allocation7], %s1538_s13, %s1538_s13, %s1539_s14  }
   0x9   :  { %1528 = dma.done.wait [#allocation4], 6144  }
   0xa   :  { %1529 = vsyncadd [#allocation4], 4294961152 }
   0xb   :  { %1530 = dma.done.wait [#allocation7], 2048  }
   0xc   :  { %1531 = vsyncadd [#allocation7], 4294965248  ;;  %v70_v0 = vld [vmem:[%s2387_s1 + $0x18] sm:$0xff]  ;;  %v1591_v1 = vld [vmem:[#allocation3 + $0x168] sm:$0xff]  ;;  %vm81_vm0 = vcmask 130048   ;;  %v1540_v39 = vmov 0.0  }
   0xd   :  { %v67_v2 = vld [vmem:[%s2387_s1] sm:$0xff]  ;;  %120 = vmatpush.msra.mxu0 %v70_v0  ;;  %315 = vmatpush.msra.mxu3 %v1591_v1  ;;  %v1597_v3 = vld [vmem:[#allocation3 + $0x150] sm:$0xff]  ;;  %v1604_v5 = vld [vmem:[#allocation3 + $0x138] sm:$0xff]  ;;  %s1541_s18 = smov [#allocation8]   ;;  %s1261_s22 = sshll.u32 %s2393_s7, 4  ;;  %s1262_s22 = int_to_ptr.hbm [resolvable:$true] %s1261_s22 }
   0xe   :  { %v1602_v4 = vld [vmem:[%s2386_s0] sm:$0xff]  ;;  %v1612_v7 = vld [vmem:[#allocation3 + $0x108] sm:$0xff]  ;;  %v1614_v8 = vld [vmem:[#allocation3 + $0x178] sm:$0xff]  ;;  %s1259_s19 = sshll.u32 %s1541_s18, 4  ;;  %s1260_s19 = int_to_ptr.vmem [resolvable:$true] %s1259_s19 }
   0xf   :  { %121 = vmatpush.msra.mxu0 %v67_v2  ;;  %316 = vmatpush.msra.mxu3 %v1597_v3  ;;  %v1609_v6 = vld [vmem:[#allocation3 + $0x120] sm:$0xff]  ;;  %v1620_v10 = vld [vmem:[#allocation3 + $0xf0] sm:$0xff]  ;;  %v1622_v11 = vld [vmem:[#allocation3 + $0x148] sm:$0xff] }
  0x10   :  { %1279 = vmatmul.msk.f32.vlgmr.msra.gmra.mxu0 %vm81_vm0, %v1602_v4  ;;  %v1618_v9 = vld [vmem:[#allocation3 + $0x160] sm:$0xff]  ;;  %v1628_v12 = vld [vmem:[%s2386_s0 + $0x8] sm:$0xff]  ;;  %v1631_v13 = vld [vmem:[#allocation3 + $0xd8] sm:$0xff] }
  0x11   :  { %317 = vmatpush.msra.mxu3 %v1604_v5  ;;  %355 = vmatpush.msrb.mxu0 %v1614_v8  ;;  %v1633_v14 = vld [vmem:[#allocation3 + $0x130] sm:$0xff]  ;;  %v1639_v15 = vld [vmem:[#allocation3 + $0xc0] sm:$0xff]  ;;  %v1641_v16 = vld [vmem:[#allocation3 + $0x118] sm:$0xff] }
  0x12   :  { %v1645_v17 = vld [vmem:[#allocation3 + $0xa8] sm:$0xff]  ;;  %v1649_v18 = vld [vmem:[#allocation3 + $0x100] sm:$0xff]  ;;  %v1651_v19 = vld [vmem:[#allocation3 + $0x90] sm:$0xff] }
  0x13   :  { %318 = vmatpush.msra.mxu3 %v1609_v6  ;;  %356 = vmatpush.msrb.mxu0 %v1618_v9  ;;  %v1657_v20 = vld [vmem:[%s2386_s0 + $0x10] sm:$0xff]  ;;  %v1660_v21 = vld [vmem:[#allocation3 + $0xe8] sm:$0xff]  ;;  %v1662_v22 = vld [vmem:[#allocation3 + $0x78] sm:$0xff] }
  0x14   :  { %v1666_v23 = vld [vmem:[#allocation3 + $0xd0] sm:$0xff]  ;;  %v1670_v24 = vld [vmem:[#allocation3 + $0x60] sm:$0xff]  ;;  %v1674_v25 = vld [vmem:[#allocation3 + $0xb8] sm:$0xff] }
  0x15   :  { %319 = vmatpush.msra.mxu3 %v1612_v7  ;;  %357 = vmatpush.msrb.mxu0 %v1622_v11  ;;  %v1676_v26 = vld [vmem:[#allocation3 + $0x48] sm:$0xff]  ;;  %v1680_v27 = vld [vmem:[#allocation3 + $0xa0] sm:$0xff]  ;;  %v1682_v28 = vld [vmem:[#allocation3 + $0x30] sm:$0xff] }
  0x16   :  { %2418 = vst [vmem:[#allocation12_spill] sm:$0xff] %v1682_v28  ;;  %v1688_v29 = vld [vmem:[%s2386_s0 + $0x18] sm:$0xff]  ;;  %v1691_v30 = vld [vmem:[#allocation3 + $0x88] sm:$0xff]  ;;  %v1697_v32 = vld [vmem:[#allocation3 + $0x70] sm:$0xff] }
  0x17   :  { %320 = vmatpush.msra.mxu3 %v1620_v10  ;;  %358 = vmatpush.msrb.mxu0 %v1633_v14  ;;  %v1693_v31 = vld [vmem:[#allocation3 + $0x18] sm:$0xff]  ;;  %v1701_v33 = vld [vmem:[#allocation3] sm:$0xff]  ;;  %v72_v34 = vld [vmem:[%s2387_s1 + $0x28] sm:$0xff] }
  0x18   :  { %1280 = vmatmul.msk.f32.gmra.mxu0 %vm81_vm0, %v1628_v12  ;;  %2419 = vst [vmem:[#allocation13_spill] sm:$0xff] %v1693_v31  ;;  %v1708_v35 = vld [vmem:[#allocation3 + $0x58] sm:$0xff]  ;;  %v1710_v36 = vld [vmem:[#allocation3 + $0x170] sm:$0xff]  ;;  %202 = vmatpush.msra.mxu2 %v72_v34  ;;  %v1717_v38 = vld [vmem:[#allocation3 + $0x40] sm:$0xff] }
  0x19   :  { %321 = vmatpush.msra.mxu3 %v1631_v13  ;;  %359 = vmatpush.msrb.mxu0 %v1641_v16  ;;  %2420 = vst [vmem:[#allocation14_spill] sm:$0xff] %v1701_v33  ;;  %v69_v37 = vld [vmem:[%s2387_s1 + $0x10] sm:$0xff]  ;;  %v1720_v40 = vld [vmem:[#allocation3 + $0x158] sm:$0xff]  ;;  %v1722_v41 = vld [vmem:[#allocation3 + $0x28] sm:$0xff] }
  0x1a   :  { %2421 = vst [vmem:[#allocation15_spill] sm:$0xff] %v1717_v38  ;;  %203 = vmatpush.msra.mxu2 %v69_v37  ;;  %v71_v42 = vld [vmem:[%s2387_s1 + $0x20] sm:$0xff]  ;;  %v68_v44 = vld [vmem:[%s2387_s1 + $0x8] sm:$0xff]  ;;  %v1741_v46 = vld [vmem:[#allocation3 + $0x10] sm:$0xff] }
  0x1b   :  { %322 = vmatpush.msra.mxu3 %v1639_v15  ;;  %360 = vmatpush.msrb.mxu0 %v1649_v18  ;;  %2422 = vst [vmem:[#allocation16_spill] sm:$0xff] %v1722_v41  ;;  %v1731_v43 = vld [vmem:[%s2386_s0 + $0x20] sm:$0xff]  ;;  %v1747_v47 = vld [vmem:[#allocation3 + $0x128] sm:$0xff]  ;;  %v1751_v48 = vld [vmem:[#allocation3 + $0x110] sm:$0xff] }
  0x1c   :  { %v1737_v45 = vld [vmem:[#allocation3 + $0x140] sm:$0xff]  ;;  %1295 = vmatmul.msk.f32.vlgmr.msra.gmra.mxu2 %vm81_vm0, %v1602_v4  ;;  %161 = vmatpush.msra.mxu1 %v71_v42  ;;  %2423 = vst [vmem:[#allocation17_spill] sm:$0xff] %v1741_v46  ;;  %v1758_v49 = vld [vmem:[#allocation3 + $0xf8] sm:$0xff]  ;;  %v1766_v50 = vld [vmem:[%s2386_s0 + $0x28] sm:$0xff] }
  0x1d   :  { %323 = vmatpush.msra.mxu3 %v1645_v17  ;;  %361 = vmatpush.msrb.mxu0 %v1660_v21  ;;  %v1769_v51 = vld [vmem:[#allocation3 + $0xe0] sm:$0xff]  ;;  %v1778_v52 = vld [vmem:[#allocation3 + $0xc8] sm:$0xff]  ;;  %v1783_v53 = vld [vmem:[#allocation3 + $0xb0] sm:$0xff] }
  0x1e   :  { %162 = vmatpush.msra.mxu1 %v68_v44  ;;  %448 = vmatpush.msrb.mxu2 %v1710_v36  ;;  %v1790_v54 = vld [vmem:[#allocation3 + $0x98] sm:$0xff]  ;;  %v1798_v55 = vld [vmem:[%s2386_s0 + $0x30] sm:$0xff]  ;;  %v1801_v56 = vld [vmem:[#allocation3 + $0x80] sm:$0xff] }
  0x1f   :  { %324 = vmatpush.msra.mxu3 %v1651_v19  ;;  %362 = vmatpush.msrb.mxu0 %v1666_v23  ;;  %v1810_v57 = vld [vmem:[#allocation3 + $0x68] sm:$0xff]  ;;  %v1815_v58 = vld [vmem:[#allocation3 + $0x50] sm:$0xff]  ;;  %v1822_v59 = vld [vmem:[#allocation3 + $0x38] sm:$0xff] }
  0x20   :  { %1281 = vmatmul.msk.f32.gmra.mxu0 %vm81_vm0, %v1657_v20  ;;  %1287 = vmatmul.msk.f32.vlgmr.msra.gmra.mxu1 %vm81_vm0, %v1602_v4  ;;  %2424 = vst [vmem:[#allocation18_spill] sm:$0xff] %v1815_v58  ;;  %v1830_v60 = vld [vmem:[%s2386_s0 + $0x38] sm:$0xff]  ;;  %v1833_v61 = vld [vmem:[#allocation3 + $0x20] sm:$0xff]  ;;  %v1842_v62 = vld [vmem:[#allocation3 + $0x8] sm:$0xff] }
  0x21   :  { %325 = vmatpush.msra.mxu3 %v1662_v22  ;;  %363 = vmatpush.msrb.mxu0 %v1674_v25  ;;  %2425 = vst [vmem:[#allocation19_spill] sm:$0xff] %v1822_v59  ;;  %v73_v0 = vld [vmem:[%s2389_s3] sm:$0x7] }
  0x22   :  { %428 = vmatpush.msrb.mxu1 %v1591_v1  ;;  %449 = vmatpush.msrb.mxu2 %v1720_v40  ;;  %2426 = vst [vmem:[#allocation20_spill] sm:$0xff] %v1833_v61  ;;  %v75_v2 = vperm.slane %v73_v0, 0 }
  0x23   :  { %326 = vmatpush.msra.mxu3 %v1670_v24  ;;  %364 = vmatpush.msrb.mxu0 %v1680_v27  ;;  %2427 = vst [vmem:[#allocation21_spill] sm:$0xff] %v1842_v62 }
  0x24   :  { %429 = vmatpush.msrb.mxu1 %v1597_v3  ;;  %1296 = vmatmul.msk.f32.gmra.mxu2 %vm81_vm0, %v1628_v12 }
  0x25   :  { %327 = vmatpush.msra.mxu3 %v1676_v26  ;;  %365 = vmatpush.msrb.mxu0 %v1691_v30 }
  0x26   :  { %430 = vmatpush.msrb.mxu1 %v1604_v5  ;;  %450 = vmatpush.msrb.mxu2 %v1737_v45 }
  0x27   :  { %328 = vmatpush.msra.mxu3 %v1682_v28  ;;  %366 = vmatpush.msrb.mxu0 %v1697_v32 }
  0x28   :  { %1282 = vmatmul.msk.f32.gmra.mxu0 %vm81_vm0, %v1688_v29  ;;  %431 = vmatpush.msrb.mxu1 %v1609_v6 }
  0x29   :  { %329 = vmatpush.msra.mxu3 %v1693_v31  ;;  %367 = vmatpush.msrb.mxu0 %v1708_v35 }
  0x2a   :  { %1288 = vmatmul.msk.f32.gmra.mxu1 %vm81_vm0, %v1628_v12  ;;  %451 = vmatpush.msrb.mxu2 %v1747_v47 }
  0x2b   :  { %330 = vmatpush.msra.mxu3 %v1701_v33  ;;  %368 = vmatpush.msrb.mxu0 %v1717_v38 }
  0x2c   :  { %331 = vmatmul.f32.vlgmr.msra.gmra.mxu3 %v1540_v39  ;;  %432 = vmatpush.msrb.mxu1 %v1612_v7 }
  0x2d   :  { %335 = vmatpush.msrb.mxu3 %v1710_v36  ;;  %369 = vmatpush.msrb.mxu0 %v1722_v41 }
  0x2e   :  { %452 = vmatpush.msrb.mxu2 %v1751_v48  ;;  %433 = vmatpush.msrb.mxu1 %v1620_v10 }
  0x2f   :  { %336 = vmatpush.msrb.mxu3 %v1720_v40  ;;  %370 = vmatpush.msrb.mxu0 %v1741_v46 }
  0x30   :  { %1283 = vmatmul.msk.f32.gmra.mxu0 %vm81_vm0, %v1731_v43  ;;  %1297 = vmatmul.msk.f32.gmra.mxu2 %vm81_vm0, %v1657_v20 }
  0x31   :  { %337 = vmatpush.msrb.mxu3 %v1737_v45  ;;  %541 = vmatpush.msra.mxu0 %v1591_v1 }
  0x32   :  { %453 = vmatpush.msrb.mxu2 %v1758_v49  ;;  %434 = vmatpush.msrb.mxu1 %v1631_v13 }
  0x33   :  { %338 = vmatpush.msrb.mxu3 %v1747_v47  ;;  %542 = vmatpush.msra.mxu0 %v1597_v3 }
  0x34   :  { %454 = vmatpush.msrb.mxu2 %v1769_v51  ;;  %1289 = vmatmul.msk.f32.gmra.mxu1 %vm81_vm0, %v1657_v20 }
  0x35   :  { %339 = vmatpush.msrb.mxu3 %v1751_v48  ;;  %543 = vmatpush.msra.mxu0 %v1604_v5 }
  0x36   :  { %435 = vmatpush.msrb.mxu1 %v1639_v15  ;;  %455 = vmatpush.msrb.mxu2 %v1778_v52 }
  0x37   :  { %340 = vmatpush.msrb.mxu3 %v1758_v49  ;;  %544 = vmatpush.msra.mxu0 %v1609_v6 }
  0x38   :  { %1284 = vmatmul.msk.f32.gmra.mxu0 %vm81_vm0, %v1766_v50  ;;  %436 = vmatpush.msrb.mxu1 %v1645_v17 }
  0x39   :  { %341 = vmatpush.msrb.mxu3 %v1769_v51  ;;  %545 = vmatpush.msra.mxu0 %v1612_v7 }
  0x3a   :  { %1298 = vmatmul.msk.f32.gmra.mxu2 %vm81_vm0, %v1688_v29  ;;  %437 = vmatpush.msrb.mxu1 %v1651_v19 }
  0x3b   :  { %342 = vmatpush.msrb.mxu3 %v1778_v52  ;;  %546 = vmatpush.msra.mxu0 %v1620_v10 }
  0x3c   :  { %456 = vmatpush.msrb.mxu2 %v1783_v53  ;;  %1290 = vmatmul.msk.f32.gmra.mxu1 %vm81_vm0, %v1688_v29 }
  0x3d   :  { %343 = vmatpush.msrb.mxu3 %v1783_v53  ;;  %547 = vmatpush.msra.mxu0 %v1631_v13 }
  0x3e   :  { %457 = vmatpush.msrb.mxu2 %v1790_v54  ;;  %438 = vmatpush.msrb.mxu1 %v1662_v22 }
  0x3f   :  { %344 = vmatpush.msrb.mxu3 %v1790_v54  ;;  %548 = vmatpush.msra.mxu0 %v1639_v15 }
  0x40   :  { %1285 = vmatmul.msk.f32.gmra.mxu0 %vm81_vm0, %v1798_v55  ;;  %458 = vmatpush.msrb.mxu2 %v1801_v56 }
  0x41   :  { %345 = vmatpush.msrb.mxu3 %v1801_v56  ;;  %439 = vmatpush.msrb.mxu1 %v1670_v24 }
  0x42   :  { %1299 = vmatmul.msk.f32.gmra.mxu2 %vm81_vm0, %v1731_v43  ;;  %549 = vmatpush.msra.mxu0 %v1645_v17 }
  0x43   :  { %346 = vmatpush.msrb.mxu3 %v1810_v57  ;;  %459 = vmatpush.msrb.mxu2 %v1810_v57 }
  0x44   :  { %440 = vmatpush.msrb.mxu1 %v1676_v26  ;;  %550 = vmatpush.msra.mxu0 %v1651_v19 }
  0x45   :  { %347 = vmatpush.msrb.mxu3 %v1815_v58  ;;  %460 = vmatpush.msrb.mxu2 %v1815_v58 }
  0x46   :  { %1291 = vmatmul.msk.f32.gmra.mxu1 %vm81_vm0, %v1731_v43  ;;  %551 = vmatpush.msra.mxu0 %v1662_v22 }
  0x47   :  { %348 = vmatpush.msrb.mxu3 %v1822_v59  ;;  %441 = vmatpush.msrb.mxu1 %v1682_v28 }
  0x48   :  { %1286 = vmatmul.msk.f32.gmra.mxu0 %vm81_vm0, %v1830_v60  ;;  %461 = vmatpush.msrb.mxu2 %v1822_v59 }
  0x49   :  { %349 = vmatpush.msrb.mxu3 %v1833_v61  ;;  %442 = vmatpush.msrb.mxu1 %v1693_v31 }
  0x4a   :  { %1300 = vmatmul.msk.f32.gmra.mxu2 %vm81_vm0, %v1766_v50  ;;  %552 = vmatpush.msra.mxu0 %v1670_v24 }
  0x4b   :  { %350 = vmatpush.msrb.mxu3 %v1842_v62  ;;  %462 = vmatpush.msrb.mxu2 %v1833_v61 }
  0x4c   :  { %351 = vmatmul.f32.vlgmr.msrb.gmra.mxu3 %v1540_v39  ;;  %443 = vmatpush.msrb.mxu1 %v1701_v33 }
  0x4d   :  { %468 = vmatpush.msra.mxu3 %v1614_v8  ;;  %553 = vmatpush.msra.mxu0 %v1676_v26 }
  0x4e   :  { %463 = vmatpush.msrb.mxu2 %v1842_v62  ;;  %1292 = vmatmul.msk.f32.gmra.mxu1 %vm81_vm0, %v1766_v50 }
  0x4f   :  { %469 = vmatpush.msra.mxu3 %v1618_v9  ;;  %561 = vmatpush.msra.mxu1 %v1710_v36 }
  0x50   :  { %371 = vmatmul.f32.vlgmr.msrb.gmra.mxu0 %v1540_v39  ;;  %581 = vmatpush.msra.mxu2 %v1614_v8  ;;  %v301_v39 = vld [vmem:[%s2390_s4] sm:$0x7] }
  0x51   :  { %470 = vmatpush.msra.mxu3 %v1622_v11  ;;  %554 = vmatpush.msra.mxu0 %v1682_v28  ;;  %v1981_v42 = vperm.slane %v301_v39, 0 }
  0x52   :  { %582 = vmatpush.msra.mxu2 %v1618_v9  ;;  %562 = vmatpush.msra.mxu1 %v1720_v40 }
  0x53   :  { %471 = vmatpush.msra.mxu3 %v1633_v14  ;;  %1301 = vmatmul.msk.f32.gmra.mxu2 %vm81_vm0, %v1798_v55  ;;  %2431 = vst [vmem:[#allocation25_spill] sm:$0xff] %v1981_v42 }
  0x54   :  { %555 = vmatpush.msra.mxu0 %v1693_v31  ;;  %563 = vmatpush.msra.mxu1 %v1737_v45 }
  0x55   :  { %472 = vmatpush.msra.mxu3 %v1641_v16  ;;  %583 = vmatpush.msra.mxu2 %v1622_v11 }
  0x56   :  { %556 = vmatpush.msra.mxu0 %v1701_v33  ;;  %564 = vmatpush.msra.mxu1 %v1747_v47 }
  0x57   :  { %473 = vmatpush.msra.mxu3 %v1649_v18  ;;  %1293 = vmatmul.msk.f32.gmra.mxu1 %vm81_vm0, %v1798_v55 }
  0x58   :  { %584 = vmatpush.msra.mxu2 %v1633_v14  ;;  %565 = vmatpush.msra.mxu1 %v1751_v48 }
  0x59   :  { %474 = vmatpush.msra.mxu3 %v1660_v21  ;;  %674 = vmatpush.msrb.mxu0 %v1710_v36 }
  0x5a   :  { %585 = vmatpush.msra.mxu2 %v1641_v16  ;;  %566 = vmatpush.msra.mxu1 %v1758_v49 }
  0x5b   :  { %475 = vmatpush.msra.mxu3 %v1666_v23  ;;  %1302 = vmatmul.msk.f32.gmra.mxu2 %vm81_vm0, %v1830_v60 }
  0x5c   :  { %675 = vmatpush.msrb.mxu0 %v1720_v40  ;;  %586 = vmatpush.msra.mxu2 %v1649_v18 }
  0x5d   :  { %476 = vmatpush.msra.mxu3 %v1674_v25  ;;  %567 = vmatpush.msra.mxu1 %v1769_v51 }
  0x5e   :  { %676 = vmatpush.msrb.mxu0 %v1737_v45  ;;  %587 = vmatpush.msra.mxu2 %v1660_v21 }
  0x5f   :  { %477 = vmatpush.msra.mxu3 %v1680_v27  ;;  %1294 = vmatmul.msk.f32.gmra.mxu1 %vm81_vm0, %v1830_v60 }
  0x60   :  { %677 = vmatpush.msrb.mxu0 %v1747_v47  ;;  %568 = vmatpush.msra.mxu1 %v1778_v52 }
  0x61   :  { %478 = vmatpush.msra.mxu3 %v1691_v30  ;;  %588 = vmatpush.msra.mxu2 %v1666_v23 }
  0x62   :  { %569 = vmatpush.msra.mxu1 %v1783_v53  ;;  %678 = vmatpush.msrb.mxu0 %v1751_v48 }
  0x63   :  { %479 = vmatpush.msra.mxu3 %v1697_v32  ;;  %589 = vmatpush.msra.mxu2 %v1674_v25 }
  0x64   :  { %570 = vmatpush.msra.mxu1 %v1790_v54  ;;  %679 = vmatpush.msrb.mxu0 %v1758_v49 }
  0x65   :  { %480 = vmatpush.msra.mxu3 %v1708_v35  ;;  %590 = vmatpush.msra.mxu2 %v1680_v27 }
  0x66   :  { %571 = vmatpush.msra.mxu1 %v1801_v56  ;;  %680 = vmatpush.msrb.mxu0 %v1769_v51 }
  0x67   :  { %481 = vmatpush.msra.mxu3 %v1717_v38  ;;  %591 = vmatpush.msra.mxu2 %v1691_v30 }
  0x68   :  { %572 = vmatpush.msra.mxu1 %v1810_v57  ;;  %681 = vmatpush.msrb.mxu0 %v1778_v52 }
  0x69   :  { %482 = vmatpush.msra.mxu3 %v1722_v41  ;;  %592 = vmatpush.msra.mxu2 %v1697_v32 }
  0x6a   :  { %573 = vmatpush.msra.mxu1 %v1815_v58  ;;  %682 = vmatpush.msrb.mxu0 %v1783_v53 }
  0x6b   :  { %483 = vmatpush.msra.mxu3 %v1741_v46  ;;  %593 = vmatpush.msra.mxu2 %v1708_v35 }
  0x6c   :  { %574 = vmatpush.msra.mxu1 %v1822_v59  ;;  %683 = vmatpush.msrb.mxu0 %v1790_v54 }
  0x6d   :  { %654 = vmatpush.msrb.mxu3 %v1591_v1  ;;  %594 = vmatpush.msra.mxu2 %v1717_v38 }
  0x6e   :  { %575 = vmatpush.msra.mxu1 %v1833_v61  ;;  %684 = vmatpush.msrb.mxu0 %v1801_v56 }
  0x6f   :  { %655 = vmatpush.msrb.mxu3 %v1597_v3  ;;  %595 = vmatpush.msra.mxu2 %v1722_v41 }
  0x70   :  { %576 = vmatpush.msra.mxu1 %v1842_v62  ;;  %685 = vmatpush.msrb.mxu0 %v1810_v57 }
  0x71   :  { %656 = vmatpush.msrb.mxu3 %v1604_v5  ;;  %596 = vmatpush.msra.mxu2 %v1741_v46 }
  0x72   :  { %686 = vmatpush.msrb.mxu0 %v1815_v58 }
  0x73   :  { %657 = vmatpush.msrb.mxu3 %v1609_v6 }
  0x74   :  { %687 = vmatpush.msrb.mxu0 %v1822_v59 }
  0x75   :  { %658 = vmatpush.msrb.mxu3 %v1612_v7 }
  0x76   :  { %688 = vmatpush.msrb.mxu0 %v1833_v61 }
  0x77   :  { %659 = vmatpush.msrb.mxu3 %v1620_v10 }
  0x78   :  { %689 = vmatpush.msrb.mxu0 %v1842_v62 }
  0x79   :  { %660 = vmatpush.msrb.mxu3 %v1631_v13 }
  0x7b   :  { %661 = vmatpush.msrb.mxu3 %v1639_v15 }
  0x7d   :  { %662 = vmatpush.msrb.mxu3 %v1645_v17 }
  0x7f   :  { %663 = vmatpush.msrb.mxu3 %v1651_v19 }
  0x81   :  { %664 = vmatpush.msrb.mxu3 %v1662_v22 }
  0x83   :  { %665 = vmatpush.msrb.mxu3 %v1670_v24 }
  0x85   :  { %666 = vmatpush.msrb.mxu3 %v1676_v26 }
  0x87   :  { %667 = vmatpush.msrb.mxu3 %v1682_v28 }
  0x89   :  { %668 = vmatpush.msrb.mxu3 %v1693_v31 }
  0x8b   :  { %669 = vmatpush.msrb.mxu3 %v1701_v33 }
  0x8d   :  { %v123_v63 = vpop.f32.mrf.mxu0 }
  0x8e   :  { %v124_v55 = vadd.f32 %v123_v63, %v75_v2 }
  0x95   :  { %v126_v4 = vpop.f32.mrf.mxu0 }
  0x96   :  { %v1972_v12 = vadd.f32 %v126_v4, %v75_v2 }
  0x98   :  { %2428 = vst [vmem:[#allocation22_spill] sm:$0xff] %v1972_v12 }
  0x9d   :  { %v129_v20 = vpop.f32.mrf.mxu0  ;;  %v164_v63 = vpop.f32.mrf.mxu1 }
  0x9e   :  { %v1974_v29 = vadd.f32 %v129_v20, %v75_v2 }
  0xa0   :  { %2429 = vst [vmem:[#allocation23_spill] sm:$0xff] %v1974_v29 }
  0xa5   :  { %v132_v34 = vpop.f32.mrf.mxu0 }
  0xa6   :  { %v1976_v37 = vadd.f32 %v132_v34, %v75_v2 }
  0xa8   :  { %2430 = vst [vmem:[#allocation24_spill] sm:$0xff] %v1976_v37 }
  0xad   :  { %v135_v43 = vpop.f32.mrf.mxu0 }
  0xae   :  { %v1983_v44 = vadd.f32 %v135_v43, %v75_v2 }
  0xaf   :  { %v332_v50 = vpop.f32.mrf.mxu3 }
  0xb0   :  { %2432 = vst [vmem:[#allocation26_spill] sm:$0xff] %v1983_v44  ;;  %v333_v60 = vadd.f32 %v332_v50, %v1981_v42  ;;  %v1992_v44 = vperm.slane %v73_v0, 1  ;;  %v1994_v50 = vperm.slane %v301_v39, 1 }
  0xb2   :  { %v375_v4 = vadd.f32 %v333_v60, %v124_v55  ;;  %2436 = vst [vmem:[#allocation30_spill] sm:$0xff] %v1992_v44  ;;  %v165_v60 = vadd.f32 %v164_v63, %v1992_v44 }
  0xb3   :  { %2437 = vst [vmem:[#allocation31_spill] sm:$0xff] %v1994_v50 }
  0xb4   :  { %v1303_v12 = vmul.f32 -1.442695, %v375_v4 }
  0xb5   :  { %v138_v20 = vpop.f32.mrf.mxu0 }
  0xb6   :  { %v1986_v29 = vadd.f32 %v138_v20, %v75_v2  ;;  %1328 = vpow2.f32 %v1303_v12 }
  0xb8   :  { %2433 = vst [vmem:[#allocation27_spill] sm:$0xff] %v1986_v29 }
  0xbc   :  { %v1329_v34 = vpop.eup %1328 }
  0xbd   :  { %v141_v37 = vpop.f32.mrf.mxu0  ;;  %v379_v33 = vadd.f32 1.0, %v1329_v34 }
  0xbe   :  { %v1988_v62 = vadd.f32 %v141_v37, %v75_v2 }
  0xbf   :  { %1330 = vrcp.f32 %v379_v33  ;;  %vm385_vm2 = vweird.f32 %v379_v33 }
  0xc0   :  { %2434 = vst [vmem:[#allocation28_spill] sm:$0xff] %v1988_v62 }
  0xc5   :  { %v144_v46 = vpop.f32.mrf.mxu0  ;;  %v1331_v43 = vpop.eup %1330 }
  0xc6   :  { %v1990_v61 = vadd.f32 %v144_v46, %v75_v2  ;;  %v381_v55 = vmul.f32 %v1331_v43, %v379_v33  ;;  %vm386_vm1 = vweird.f32 %v1331_v43  ;;  %v391_v46 = vand.u32 2147483648, %v379_v33 }
  0xc7   :  { %v1998_v2 = vperm.slane %v301_v39, 2  ;;  %vm387_vm3 = vmor %vm385_vm2, %vm386_vm1 }
  0xc8   :  { %2435 = vst [vmem:[#allocation29_spill] sm:$0xff] %v1990_v61  ;;  %v382_v20 = vsub.f32 1.0, %v381_v55  ;;  %v389_v61 = vand.u32 2147483647, %v379_v33  ;;  %v392_v44 = vor.u32 1.1754944e-38, %v391_v46  ;;  %v2001_v55 = vperm.slane %v73_v0, 2 }
  0xca   :  { %v383_v34 = vmul.f32 %v1331_v43, %v382_v20  ;;  %vm390_vm4 = vcmp.eq.f32.partialorder %v389_v61, 8.507059e+37 }
  0xcc   :  { %v384_v29 = vadd.f32 %v1331_v43, %v383_v34 }
  0xcd   :  { %v372_v31 = vpop.f32.mrf.mxu0 }
  0xce   :  { %v388_v41 = vsel %vm387_vm3, %v1331_v43, %v384_v29 }
  0xcf   :  { %v352_v4 = vpop.f32.mrf.mxu3 }
  0xd0   :  { %v353_v12 = vadd.f32 %v352_v4, %v1994_v50  ;;  %v373_v4 = vadd.f32 %v372_v31, %v1998_v2 }
  0xd2   :  { %v395_v37 = vadd.f32 %v353_v12, %v165_v60  ;;  %v205_v60 = vpop.f32.mrf.mxu2 }
  0xd3   :  { %v206_v39 = vadd.f32 %v205_v60, %v2001_v55  ;;  %v2442_v60 = vld [vmem:[#allocation17_spill] sm:$0xff] }
  0xd4   :  { %v1304_v62 = vmul.f32 -1.442695, %v395_v37 }
  0xd6   :  { %1332 = vpow2.f32 %v1304_v62  ;;  %v393_v62 = vsel %vm390_vm4, %v392_v44, %v388_v41 }
  0xd7   :  { %v415_v12 = vmul.f32 %v393_v62, %v373_v4  ;;  %v2441_v62 = vld [vmem:[#allocation20_spill] sm:$0xff] }
  0xd9   :  { %v416_v33 = vadd.f32 %v415_v12, %v206_v39  ;;  %v2443_v12 = vld [vmem:[#allocation14_spill] sm:$0xff]  ;;  %v2444_v39 = vld [vmem:[#allocation21_spill] sm:$0xff] }
  0xdc   :  { %v1333_v42 = vpop.eup %1332 }
  0xdd   :  { %v399_v63 = vadd.f32 1.0, %v1333_v42 }
  0xdf   :  { %1334 = vrcp.f32 %v399_v63  ;;  %v411_v50 = vand.u32 2147483648, %v399_v63  ;;  %v409_v29 = vand.u32 2147483647, %v399_v63  ;;  %vm405_vm6 = vweird.f32 %v399_v63 }
  0xe0   :  { %1336 = vtanh.f32 %v416_v33 }
  0xe1   :  { %v412_v31 = vor.u32 1.1754944e-38, %v411_v50  ;;  %vm410_vm8 = vcmp.eq.f32.partialorder %v409_v29, 8.507059e+37  ;;  %v2439_v50 = vld [vmem:[#allocation16_spill] sm:$0xff] }
  0xe5   :  { %v1335_v20 = vpop.eup %1334 }
  0xe6   :  { %v401_v37 = vmul.f32 %v1335_v20, %v399_v63  ;;  %vm406_vm5 = vweird.f32 %v1335_v20  ;;  %v1337_v44 = vpop.eup %1336  ;;  %v2440_v63 = vld [vmem:[#allocation13_spill] sm:$0xff] }
  0xe7   :  { %vm407_vm7 = vmor %vm405_vm6, %vm406_vm5 }
  0xe8   :  { %v402_v34 = vsub.f32 1.0, %v401_v37  ;;  %v208_v37 = vpop.f32.mrf.mxu2 }
  0xea   :  { %v403_v59 = vmul.f32 %v1335_v20, %v402_v34 }
  0xec   :  { %v404_v42 = vadd.f32 %v1335_v20, %v403_v59  ;;  %v2438_v59 = vld [vmem:[#allocation19_spill] sm:$0xff] }
  0xee   :  { %v408_v61 = vsel %vm407_vm7, %v1335_v20, %v404_v42  ;;  %v167_v20 = vpop.f32.mrf.mxu1 }
  0xef   :  { %v413_v41 = vsel %vm410_vm8, %v412_v31, %v408_v61 }
  0xf0   :  { %v418_v0 = vsub.f32 1.0, %v413_v41  ;;  %v420_v46 = vmul.f32 0.0, %v413_v41  ;;  %v2059_v34 = vpop.f32.mrf.mxu2 }
  0xf1   :  { %2446 = vst [vmem:[#allocation33_spill] sm:$0xff] %v2059_v34 }
  0xf2   :  { %v419_v43 = vmul.f32 %v1337_v44, %v418_v0 }
  0xf4   :  { %v2004_v4 = vadd.f32 %v420_v46, %v419_v43 }
  0xf6   :  { %444 = vmatmul.f32.vlgmr.msrb.gmra.mxu1 %v2004_v4  ;;  %464 = vmatmul.f32.vlgmr.msrb.gmra.mxu2 %v2004_v4  ;;  %v2057_v33 = vpop.f32.mrf.mxu1 }
  0xf7   :  { %484 = vmatmul.f32.vlgmr.msra.gmra.mxu3 %v2004_v4  ;;  %694 = vmatpush.msrb.mxu1 %v1614_v8  ;;  %2445 = vst [vmem:[#allocation32_spill] sm:$0xff] %v2057_v33 }
  0xf8   :  { %767 = vmatpush.msrb.mxu2 %v1591_v1  ;;  %787 = vmatpush.msra.mxu3 %v1710_v36  ;;  %v2063_v42 = vpop.f32.mrf.mxu2 }
  0xf9   :  { %695 = vmatpush.msrb.mxu1 %v1618_v9  ;;  %2448 = vst [vmem:[#allocation35_spill] sm:$0xff] %v2063_v42  ;;  %v2458_v42 = vld [vmem:[#allocation22_spill] sm:$0xff] }
  0xfa   :  { %768 = vmatpush.msrb.mxu2 %v1597_v3  ;;  %788 = vmatpush.msra.mxu3 %v1720_v40 }
  0xfb   :  { %696 = vmatpush.msrb.mxu1 %v1622_v11 }
  0xfc   :  { %769 = vmatpush.msrb.mxu2 %v1604_v5  ;;  %789 = vmatpush.msra.mxu3 %v1737_v45 }
  0xfd   :  { %697 = vmatpush.msrb.mxu1 %v1633_v14 }
  0xfe   :  { %770 = vmatpush.msrb.mxu2 %v1609_v6  ;;  %790 = vmatpush.msra.mxu3 %v1747_v47  ;;  %v2061_v29 = vpop.f32.mrf.mxu1 }
  0xff   :  { %698 = vmatpush.msrb.mxu1 %v1641_v16  ;;  %2447 = vst [vmem:[#allocation34_spill] sm:$0xff] %v2061_v29  ;;  %v2457_v29 = vld [vmem:[#allocation25_spill] sm:$0xff] }
 0x100   :  { %771 = vmatpush.msrb.mxu2 %v1612_v7  ;;  %791 = vmatpush.msra.mxu3 %v1751_v48  ;;  %v2067_v61 = vpop.f32.mrf.mxu2 }
 0x101   :  { %699 = vmatpush.msrb.mxu1 %v1649_v18  ;;  %2450 = vst [vmem:[#allocation37_spill] sm:$0xff] %v2067_v61  ;;  %v2459_v61 = vld [vmem:[#allocation30_spill] sm:$0xff] }
 0x102   :  { %772 = vmatpush.msrb.mxu2 %v1620_v10  ;;  %792 = vmatpush.msra.mxu3 %v1758_v49 }
 0x103   :  { %700 = vmatpush.msrb.mxu1 %v1660_v21 }
 0x104   :  { %773 = vmatpush.msrb.mxu2 %v1631_v13  ;;  %793 = vmatpush.msra.mxu3 %v1769_v51 }
 0x105   :  { %701 = vmatpush.msrb.mxu1 %v1666_v23 }
 0x106   :  { %774 = vmatpush.msrb.mxu2 %v1639_v15  ;;  %794 = vmatpush.msra.mxu3 %v1778_v52  ;;  %v2065_v31 = vpop.f32.mrf.mxu1 }
 0x107   :  { %702 = vmatpush.msrb.mxu1 %v1674_v25  ;;  %2449 = vst [vmem:[#allocation36_spill] sm:$0xff] %v2065_v31 }
 0x108   :  { %775 = vmatpush.msrb.mxu2 %v1645_v17  ;;  %795 = vmatpush.msra.mxu3 %v1783_v53  ;;  %v2071_v0 = vpop.f32.mrf.mxu2 }
 0x109   :  { %703 = vmatpush.msrb.mxu1 %v1680_v27  ;;  %2452 = vst [vmem:[#allocation39_spill] sm:$0xff] %v2071_v0 }
 0x10a   :  { %776 = vmatpush.msrb.mxu2 %v1651_v19  ;;  %796 = vmatpush.msra.mxu3 %v1790_v54 }
 0x10b   :  { %704 = vmatpush.msrb.mxu1 %v1691_v30 }
 0x10c   :  { %777 = vmatpush.msrb.mxu2 %v1662_v22  ;;  %797 = vmatpush.msra.mxu3 %v1801_v56 }
 0x10d   :  { %705 = vmatpush.msrb.mxu1 %v1697_v32 }
 0x10e   :  { %778 = vmatpush.msrb.mxu2 %v1670_v24  ;;  %798 = vmatpush.msra.mxu3 %v1810_v57  ;;  %v2069_v41 = vpop.f32.mrf.mxu1 }
 0x10f   :  { %706 = vmatpush.msrb.mxu1 %v1708_v35  ;;  %2451 = vst [vmem:[#allocation38_spill] sm:$0xff] %v2069_v41  ;;  %v2460_v41 = vld [vmem:[#allocation31_spill] sm:$0xff] }
 0x110   :  { %779 = vmatpush.msrb.mxu2 %v1676_v26  ;;  %799 = vmatpush.msra.mxu3 %v1815_v58  ;;  %v2075_v43 = vpop.f32.mrf.mxu2 }
 0x111   :  { %707 = vmatpush.msrb.mxu1 %v1717_v38  ;;  %2454 = vst [vmem:[#allocation41_spill] sm:$0xff] %v2075_v43 }
 0x112   :  { %780 = vmatpush.msrb.mxu2 %v1682_v28  ;;  %800 = vmatpush.msra.mxu3 %v2438_v59 }
 0x113   :  { %708 = vmatpush.msrb.mxu1 %v2439_v50 }
 0x114   :  { %781 = vmatpush.msrb.mxu2 %v2440_v63  ;;  %801 = vmatpush.msra.mxu3 %v2441_v62  ;;  %v168_v62 = vadd.f32 %v167_v20, %v2459_v61 }
 0x115   :  { %709 = vmatpush.msrb.mxu1 %v2442_v60 }
 0x116   :  { %782 = vmatpush.msrb.mxu2 %v2443_v12  ;;  %802 = vmatpush.msra.mxu3 %v2444_v39  ;;  %v2073_v44 = vpop.f32.mrf.mxu1 }
 0x117   :  { %2453 = vst [vmem:[#allocation40_spill] sm:$0xff] %v2073_v44 }
 0x118   :  { %v2079_v33 = vpop.f32.mrf.mxu2 }
 0x119   :  { %2456 = vst [vmem:[#allocation43_spill] sm:$0xff] %v2079_v33 }
 0x11e   :  { %v2077_v46 = vpop.f32.mrf.mxu1 }
 0x11f   :  { %2455 = vst [vmem:[#allocation42_spill] sm:$0xff] %v2077_v46 }
 0x173   :  { %v445_v34 = vpop.f32.mrf.mxu1 }
 0x174   :  { %v446_v39 = vadd.f32 %v445_v34, %v2457_v29 }
 0x176   :  { %v488_v12 = vadd.f32 %v446_v39, %v2458_v42 }
 0x178   :  { %v1305_v31 = vmul.f32 -1.442695, %v488_v12 }
 0x179   :  { %v465_v60 = vpop.f32.mrf.mxu2 }
 0x17a   :  { %1338 = vpow2.f32 %v1305_v31  ;;  %v466_v0 = vadd.f32 %v465_v60, %v2460_v41  ;;  %v485_v31 = vpop.f32.mrf.mxu3 }
 0x17c   :  { %v508_v63 = vadd.f32 %v466_v0, %v168_v62 }
 0x17e   :  { %v1306_v44 = vmul.f32 -1.442695, %v508_v63 }
 0x180   :  { %v1339_v50 = vpop.eup %1338  ;;  %1340 = vpow2.f32 %v1306_v44  ;;  %v209_v44 = vadd.f32 %v208_v37, %v2001_v55 }
 0x181   :  { %v492_v43 = vadd.f32 1.0, %v1339_v50  ;;  %v486_v50 = vadd.f32 %v485_v31, %v1998_v2 }
 0x183   :  { %1342 = vrcp.f32 %v492_v43  ;;  %v504_v39 = vand.u32 2147483648, %v492_v43  ;;  %v502_v42 = vand.u32 2147483647, %v492_v43  ;;  %vm498_vm10 = vweird.f32 %v492_v43 }
 0x185   :  { %v505_v63 = vor.u32 1.1754944e-38, %v504_v39  ;;  %vm503_vm12 = vcmp.eq.f32.partialorder %v502_v42, 8.507059e+37 }
 0x186   :  { %v1341_v46 = vpop.eup %1340 }
 0x187   :  { %v512_v33 = vadd.f32 1.0, %v1341_v46 }
 0x189   :  { %v1343_v59 = vpop.eup %1342  ;;  %1344 = vrcp.f32 %v512_v33  ;;  %v522_v28 = vand.u32 2147483647, %v512_v33  ;;  %vm518_vm14 = vweird.f32 %v512_v33 }
 0x18a   :  { %v494_v34 = vmul.f32 %v1343_v59, %v492_v43  ;;  %vm499_vm9 = vweird.f32 %v1343_v59 }
 0x18b   :  { %vm500_vm11 = vmor %vm498_vm10, %vm499_vm9  ;;  %vm523_vm0 = vcmp.eq.f32.partialorder %v522_v28, 8.507059e+37 }
 0x18c   :  { %v495_v29 = vsub.f32 1.0, %v494_v34 }
 0x18e   :  { %v496_v12 = vmul.f32 %v1343_v59, %v495_v29  ;;  %v524_v29 = vand.u32 2147483648, %v512_v33 }
 0x18f   :  { %v1345_v20 = vpop.eup %1344 }
 0x190   :  { %v514_v61 = vmul.f32 %v1345_v20, %v512_v33  ;;  %v497_v60 = vadd.f32 %v1343_v59, %v496_v12  ;;  %vm519_vm13 = vweird.f32 %v1345_v20  ;;  %v525_v39 = vor.u32 1.1754944e-38, %v524_v29 }
 0x191   :  { %vm520_vm15 = vmor %vm518_vm14, %vm519_vm13 }
 0x192   :  { %v515_v62 = vsub.f32 1.0, %v514_v61  ;;  %v501_v0 = vsel %vm500_vm11, %v1343_v59, %v497_v60 }
 0x193   :  { %v506_v46 = vsel %vm503_vm12, %v505_v63, %v501_v0 }
 0x194   :  { %v528_v34 = vmul.f32 %v506_v46, %v486_v50  ;;  %v516_v41 = vmul.f32 %v1345_v20, %v515_v62 }
 0x196   :  { %v529_v38 = vadd.f32 %v528_v34, %v209_v44  ;;  %v517_v58 = vadd.f32 %v1345_v20, %v516_v41 }
 0x198   :  { %1346 = vtanh.f32 %v529_v38  ;;  %v521_v43 = vsel %vm520_vm15, %v1345_v20, %v517_v58 }
 0x199   :  { %v526_v61 = vsel %vm523_vm0, %v525_v39, %v521_v43  ;;  %v2476_v39 = vld [vmem:[#allocation33_spill] sm:$0xff] }
 0x19a   :  { %v531_v12 = vsub.f32 1.0, %v526_v61  ;;  %v533_v37 = vmul.f32 %v526_v61, %v2004_v4  ;;  %v212_v61 = vadd.f32 %v2476_v39, %v2001_v55 }
 0x19e   :  { %v1347_v59 = vpop.eup %1346 }
 0x19f   :  { %v532_v42 = vmul.f32 %v1347_v59, %v531_v12 }
 0x1a1   :  { %v2088_v31 = vadd.f32 %v533_v37, %v532_v42 }
 0x1a3   :  { %557 = vmatmul.f32.vlgmr.msra.gmra.mxu0 %v2088_v31  ;;  %577 = vmatmul.f32.vlgmr.msra.gmra.mxu1 %v2088_v31 }
 0x1a4   :  { %597 = vmatmul.f32.vlgmr.msra.gmra.mxu2 %v2088_v31  ;;  %807 = vmatpush.msra.mxu0 %v1614_v8  ;;  %v2466_v8 = vld [vmem:[#allocation13_spill] sm:$0xff] }
 0x1a5   :  { %880 = vmatpush.msra.mxu1 %v1591_v1  ;;  %900 = vmatpush.msra.mxu2 %v1710_v36  ;;  %v2461_v1 = vld [vmem:[#allocation18_spill] sm:$0xff] }
 0x1a6   :  { %808 = vmatpush.msra.mxu0 %v1618_v9  ;;  %v2467_v9 = vld [vmem:[#allocation20_spill] sm:$0xff] }
 0x1a7   :  { %881 = vmatpush.msra.mxu1 %v1597_v3  ;;  %901 = vmatpush.msra.mxu2 %v1720_v40  ;;  %v2462_v3 = vld [vmem:[#allocation15_spill] sm:$0xff] }
 0x1a8   :  { %809 = vmatpush.msra.mxu0 %v1622_v11  ;;  %v2469_v11 = vld [vmem:[#allocation14_spill] sm:$0xff] }
 0x1a9   :  { %882 = vmatpush.msra.mxu1 %v1604_v5  ;;  %902 = vmatpush.msra.mxu2 %v1737_v45  ;;  %v2463_v5 = vld [vmem:[#allocation12_spill] sm:$0xff] }
 0x1aa   :  { %810 = vmatpush.msra.mxu0 %v1633_v14 }
 0x1ab   :  { %883 = vmatpush.msra.mxu1 %v1609_v6  ;;  %903 = vmatpush.msra.mxu2 %v1747_v47  ;;  %v2464_v6 = vld [vmem:[#allocation19_spill] sm:$0xff] }
 0x1ac   :  { %811 = vmatpush.msra.mxu0 %v1641_v16  ;;  %v2471_v16 = vld [vmem:[#allocation30_spill] sm:$0xff] }
 0x1ad   :  { %884 = vmatpush.msra.mxu1 %v1612_v7  ;;  %904 = vmatpush.msra.mxu2 %v1751_v48  ;;  %v2465_v7 = vld [vmem:[#allocation16_spill] sm:$0xff] }
 0x1ae   :  { %812 = vmatpush.msra.mxu0 %v1649_v18 }
 0x1af   :  { %885 = vmatpush.msra.mxu1 %v1620_v10  ;;  %905 = vmatpush.msra.mxu2 %v1758_v49  ;;  %v2468_v10 = vld [vmem:[#allocation17_spill] sm:$0xff] }
 0x1b0   :  { %813 = vmatpush.msra.mxu0 %v1660_v21 }
 0x1b1   :  { %886 = vmatpush.msra.mxu1 %v1631_v13  ;;  %906 = vmatpush.msra.mxu2 %v1769_v51  ;;  %v2470_v13 = vld [vmem:[#allocation21_spill] sm:$0xff] }
 0x1b2   :  { %814 = vmatpush.msra.mxu0 %v1666_v23 }
 0x1b3   :  { %887 = vmatpush.msra.mxu1 %v1639_v15  ;;  %907 = vmatpush.msra.mxu2 %v1778_v52 }
 0x1b4   :  { %815 = vmatpush.msra.mxu0 %v1674_v25 }
 0x1b5   :  { %888 = vmatpush.msra.mxu1 %v1645_v17  ;;  %908 = vmatpush.msra.mxu2 %v1783_v53  ;;  %v2472_v17 = vld [vmem:[#allocation32_spill] sm:$0xff] }
 0x1b6   :  { %816 = vmatpush.msra.mxu0 %v1680_v27  ;;  %v171_v18 = vadd.f32 %v2472_v17, %v2471_v16  ;;  %v2155_v17 = vld [vmem:[#allocation3 + $0x178] sm:$0xff] }
 0x1b7   :  { %889 = vmatpush.msra.mxu1 %v1651_v19  ;;  %909 = vmatpush.msra.mxu2 %v1790_v54  ;;  %v2473_v19 = vld [vmem:[#allocation25_spill] sm:$0xff] }
 0x1b8   :  { %817 = vmatpush.msra.mxu0 %v1691_v30 }
 0x1b9   :  { %890 = vmatpush.msra.mxu1 %v1662_v22  ;;  %910 = vmatpush.msra.mxu2 %v1801_v56  ;;  %v2474_v22 = vld [vmem:[#allocation31_spill] sm:$0xff] }
 0x1ba   :  { %818 = vmatpush.msra.mxu0 %v1697_v32 }
 0x1bb   :  { %891 = vmatpush.msra.mxu1 %v1670_v24  ;;  %911 = vmatpush.msra.mxu2 %v1810_v57  ;;  %v2475_v24 = vld [vmem:[#allocation23_spill] sm:$0xff] }
 0x1bc   :  { %819 = vmatpush.msra.mxu0 %v1708_v35 }
 0x1bd   :  { %892 = vmatpush.msra.mxu1 %v1676_v26  ;;  %912 = vmatpush.msra.mxu2 %v2461_v1 }
 0x1be   :  { %820 = vmatpush.msra.mxu0 %v2462_v3 }
 0x1bf   :  { %893 = vmatpush.msra.mxu1 %v2463_v5  ;;  %913 = vmatpush.msra.mxu2 %v2464_v6 }
 0x1c0   :  { %821 = vmatpush.msra.mxu0 %v2465_v7 }
 0x1c1   :  { %894 = vmatpush.msra.mxu1 %v2466_v8  ;;  %914 = vmatpush.msra.mxu2 %v2467_v9 }
 0x1c2   :  { %822 = vmatpush.msra.mxu0 %v2468_v10 }
 0x1c3   :  { %895 = vmatpush.msra.mxu1 %v2469_v11  ;;  %915 = vmatpush.msra.mxu2 %v2470_v13 }
 0x220   :  { %v558_v14 = vpop.f32.mrf.mxu0  ;;  %v578_v15 = vpop.f32.mrf.mxu1 }
 0x221   :  { %v559_v21 = vadd.f32 %v558_v14, %v2473_v19  ;;  %v579_v23 = vadd.f32 %v578_v15, %v2474_v22 }
 0x223   :  { %v601_v25 = vadd.f32 %v559_v21, %v2475_v24  ;;  %v621_v26 = vadd.f32 %v579_v23, %v171_v18  ;;  %v2158_v18 = vld [vmem:[#allocation3 + $0x168] sm:$0xff]  ;;  %v2161_v21 = vld [vmem:[#allocation3 + $0x170] sm:$0xff]  ;;  %v2170_v24 = vld [vmem:[#allocation3 + $0x158] sm:$0xff] }
 0x224   :  { %v2167_v23 = vld [vmem:[#allocation3 + $0x150] sm:$0xff] }
 0x225   :  { %v1307_v27 = vmul.f32 -1.442695, %v601_v25  ;;  %v1308_v28 = vmul.f32 -1.442695, %v621_v26  ;;  %v2173_v25 = vld [vmem:[#allocation3 + $0x148] sm:$0xff]  ;;  %v2176_v26 = vld [vmem:[#allocation3 + $0x138] sm:$0xff] }
 0x227   :  { %1348 = vpow2.f32 %v1307_v27  ;;  %v598_v62 = vpop.f32.mrf.mxu2  ;;  %v2180_v27 = vld [vmem:[#allocation3 + $0x130] sm:$0xff] }
 0x228   :  { %1350 = vpow2.f32 %v1308_v28  ;;  %v599_v46 = vadd.f32 %v598_v62, %v1998_v2  ;;  %v2183_v28 = vld [vmem:[#allocation3 + $0x120] sm:$0xff]  ;;  %v2477_v62 = vld [vmem:[#allocation34_spill] sm:$0xff] }
 0x22d   :  { %v1349_v30 = vpop.eup %1348 }
 0x22e   :  { %v1351_v32 = vpop.eup %1350  ;;  %v605_v35 = vadd.f32 1.0, %v1349_v30  ;;  %v2187_v30 = vld [vmem:[#allocation3 + $0x118] sm:$0xff] }
 0x22f   :  { %v625_v36 = vadd.f32 1.0, %v1351_v32  ;;  %v2190_v32 = vld [vmem:[#allocation3 + $0x108] sm:$0xff] }
 0x230   :  { %1352 = vrcp.f32 %v605_v35  ;;  %v617_v20 = vand.u32 2147483648, %v605_v35  ;;  %v615_v63 = vand.u32 2147483647, %v605_v35  ;;  %vm611_vm2 = vweird.f32 %v605_v35 }
 0x231   :  { %1354 = vrcp.f32 %v625_v36  ;;  %v637_v59 = vand.u32 2147483648, %v625_v36  ;;  %vm631_vm6 = vweird.f32 %v625_v36  ;;  %v635_v42 = vand.u32 2147483647, %v625_v36 }
 0x232   :  { %v618_v44 = vor.u32 1.1754944e-38, %v617_v20  ;;  %vm616_vm4 = vcmp.eq.f32.partialorder %v615_v63, 8.507059e+37  ;;  %v2253_v20 = vld [vmem:[#allocation3 + $0x30] sm:$0xff]  ;;  %v2267_v63 = vld [vmem:[#allocation3] sm:$0xff] }
 0x233   :  { %v638_v5 = vor.u32 1.1754944e-38, %v637_v59  ;;  %vm636_vm8 = vcmp.eq.f32.partialorder %v635_v42, 8.507059e+37 }
 0x236   :  { %v1353_v38 = vpop.eup %1352 }
 0x237   :  { %v1355_v40 = vpop.eup %1354  ;;  %v607_v58 = vmul.f32 %v1353_v38, %v605_v35  ;;  %vm612_vm1 = vweird.f32 %v1353_v38  ;;  %v2197_v35 = vld [vmem:[#allocation3 + $0xf0] sm:$0xff] }
 0x238   :  { %v627_v4 = vmul.f32 %v1355_v40, %v625_v36  ;;  %vm613_vm3 = vmor %vm611_vm2, %vm612_vm1  ;;  %vm632_vm5 = vweird.f32 %v1355_v40  ;;  %v2204_v36 = vld [vmem:[#allocation3 + $0xd8] sm:$0xff] }
 0x239   :  { %v608_v33 = vsub.f32 1.0, %v607_v58  ;;  %vm633_vm7 = vmor %vm631_vm6, %vm632_vm5  ;;  %v2225_v58 = vld [vmem:[#allocation3 + $0x90] sm:$0xff] }
 0x23a   :  { %v628_v41 = vsub.f32 1.0, %v627_v4  ;;  %v2232_v4 = vld [vmem:[#allocation3 + $0x78] sm:$0xff] }
 0x23b   :  { %v609_v60 = vmul.f32 %v1353_v38, %v608_v33  ;;  %v2239_v33 = vld [vmem:[#allocation3 + $0x60] sm:$0xff] }
 0x23c   :  { %v629_v50 = vmul.f32 %v1355_v40, %v628_v41  ;;  %v2246_v41 = vld [vmem:[#allocation3 + $0x48] sm:$0xff] }
 0x23d   :  { %v610_v0 = vadd.f32 %v1353_v38, %v609_v60  ;;  %v2260_v60 = vld [vmem:[#allocation3 + $0x18] sm:$0xff] }
 0x23e   :  { %v630_v43 = vadd.f32 %v1355_v40, %v629_v50  ;;  %v174_v50 = vadd.f32 %v2477_v62, %v2471_v16 }
 0x23f   :  { %v614_v34 = vsel %vm613_vm3, %v1353_v38, %v610_v0  ;;  %v2211_v38 = vld [vmem:[#allocation3 + $0xc0] sm:$0xff] }
 0x240   :  { %v619_v29 = vsel %vm616_vm4, %v618_v44, %v614_v34  ;;  %v634_v3 = vsel %vm633_vm7, %v1355_v40, %v630_v43  ;;  %v2218_v40 = vld [vmem:[#allocation3 + $0xa8] sm:$0xff] }
 0x241   :  { %v641_v12 = vmul.f32 %v619_v29, %v599_v46  ;;  %v639_v7 = vsel %vm636_vm8, %v638_v5, %v634_v3  ;;  %v2478_v29 = vld [vmem:[#allocation24_spill] sm:$0xff] }
 0x242   :  { %v644_v8 = vsub.f32 1.0, %v639_v7  ;;  %v646_v14 = vmul.f32 %v639_v7, %v2088_v31  ;;  %v2164_v31 = vld [vmem:[#allocation3 + $0x160] sm:$0xff] }
 0x243   :  { %v642_v37 = vadd.f32 %v641_v12, %v212_v61 }
 0x245   :  { %1356 = vtanh.f32 %v642_v37 }
 0x24b   :  { %v1357_v10 = vpop.eup %1356 }
 0x24c   :  { %v645_v11 = vmul.f32 %v1357_v10, %v644_v8 }
 0x24e   :  { %v2150_v15 = vadd.f32 %v646_v14, %v645_v11 }
 0x250   :  { %670 = vmatmul.f32.vlgmr.msrb.gmra.mxu3 %v2150_v15  ;;  %690 = vmatmul.f32.vlgmr.msrb.gmra.mxu0 %v2150_v15 }
 0x251   :  { %710 = vmatmul.f32.vlgmr.msrb.gmra.mxu1 %v2150_v15  ;;  %920 = vmatpush.msrb.mxu3 %v2155_v17 }
 0x252   :  { %993 = vmatpush.msrb.mxu0 %v2158_v18  ;;  %1013 = vmatpush.msrb.mxu1 %v2161_v21 }
 0x253   :  { %921 = vmatpush.msrb.mxu3 %v2164_v31 }
 0x254   :  { %994 = vmatpush.msrb.mxu0 %v2167_v23  ;;  %1014 = vmatpush.msrb.mxu1 %v2170_v24 }
 0x255   :  { %922 = vmatpush.msrb.mxu3 %v2173_v25 }
 0x256   :  { %995 = vmatpush.msrb.mxu0 %v2176_v26  ;;  %1015 = vmatpush.msrb.mxu1 %v1737_v45  ;;  %v2194_v45 = vld [vmem:[#allocation3 + $0x100] sm:$0xff] }
 0x257   :  { %923 = vmatpush.msrb.mxu3 %v2180_v27 }
 0x258   :  { %996 = vmatpush.msrb.mxu0 %v2183_v28  ;;  %1016 = vmatpush.msrb.mxu1 %v1747_v47  ;;  %v2201_v47 = vld [vmem:[#allocation3 + $0xe8] sm:$0xff] }
 0x259   :  { %924 = vmatpush.msrb.mxu3 %v2187_v30 }
 0x25a   :  { %997 = vmatpush.msrb.mxu0 %v2190_v32  ;;  %1017 = vmatpush.msrb.mxu1 %v1751_v48  ;;  %v2208_v48 = vld [vmem:[#allocation3 + $0xd0] sm:$0xff] }
 0x25b   :  { %925 = vmatpush.msrb.mxu3 %v2194_v45 }
 0x25c   :  { %998 = vmatpush.msrb.mxu0 %v2197_v35  ;;  %1018 = vmatpush.msrb.mxu1 %v1758_v49  ;;  %v2215_v49 = vld [vmem:[#allocation3 + $0xb8] sm:$0xff] }
 0x25d   :  { %926 = vmatpush.msrb.mxu3 %v2201_v47 }
 0x25e   :  { %999 = vmatpush.msrb.mxu0 %v2204_v36  ;;  %1019 = vmatpush.msrb.mxu1 %v1769_v51  ;;  %v2222_v51 = vld [vmem:[#allocation3 + $0xa0] sm:$0xff] }
 0x25f   :  { %927 = vmatpush.msrb.mxu3 %v2208_v48 }
 0x260   :  { %1000 = vmatpush.msrb.mxu0 %v2211_v38  ;;  %1020 = vmatpush.msrb.mxu1 %v1778_v52  ;;  %v2229_v52 = vld [vmem:[#allocation3 + $0x88] sm:$0xff] }
 0x261   :  { %928 = vmatpush.msrb.mxu3 %v2215_v49 }
 0x262   :  { %1001 = vmatpush.msrb.mxu0 %v2218_v40  ;;  %1021 = vmatpush.msrb.mxu1 %v1783_v53  ;;  %v2236_v53 = vld [vmem:[#allocation3 + $0x70] sm:$0xff] }
 0x263   :  { %929 = vmatpush.msrb.mxu3 %v2222_v51 }
 0x264   :  { %1002 = vmatpush.msrb.mxu0 %v2225_v58  ;;  %1022 = vmatpush.msrb.mxu1 %v1790_v54  ;;  %v2243_v54 = vld [vmem:[#allocation3 + $0x58] sm:$0xff] }
 0x265   :  { %930 = vmatpush.msrb.mxu3 %v2229_v52 }
 0x266   :  { %1003 = vmatpush.msrb.mxu0 %v2232_v4  ;;  %1023 = vmatpush.msrb.mxu1 %v1801_v56  ;;  %v2250_v56 = vld [vmem:[#allocation3 + $0x40] sm:$0xff] }
 0x267   :  { %931 = vmatpush.msrb.mxu3 %v2236_v53 }
 0x268   :  { %1004 = vmatpush.msrb.mxu0 %v2239_v33  ;;  %1024 = vmatpush.msrb.mxu1 %v1810_v57  ;;  %v2257_v57 = vld [vmem:[#allocation3 + $0x28] sm:$0xff] }
 0x269   :  { %932 = vmatpush.msrb.mxu3 %v2243_v54 }
 0x26a   :  { %1005 = vmatpush.msrb.mxu0 %v2246_v41  ;;  %1025 = vmatpush.msrb.mxu1 %v2461_v1  ;;  %v2264_v1 = vld [vmem:[#allocation3 + $0x10] sm:$0xff] }
 0x26b   :  { %933 = vmatpush.msrb.mxu3 %v2250_v56 }
 0x26c   :  { %1006 = vmatpush.msrb.mxu0 %v2253_v20  ;;  %1026 = vmatpush.msrb.mxu1 %v2464_v6 }
 0x26d   :  { %934 = vmatpush.msrb.mxu3 %v2257_v57 }
 0x26e   :  { %1007 = vmatpush.msrb.mxu0 %v2260_v60  ;;  %1027 = vmatpush.msrb.mxu1 %v2467_v9 }
 0x26f   :  { %935 = vmatpush.msrb.mxu3 %v2264_v1 }
 0x270   :  { %1008 = vmatpush.msrb.mxu0 %v2267_v63  ;;  %1028 = vmatpush.msrb.mxu1 %v2470_v13 }
 0x2cd   :  { %v691_v6 = vpop.f32.mrf.mxu0 }
 0x2ce   :  { %v692_v0 = vadd.f32 %v691_v6, %v2474_v22  ;;  %v711_v6 = vpop.f32.mrf.mxu1 }
 0x2d0   :  { %v734_v44 = vadd.f32 %v692_v0, %v174_v50 }
 0x2d2   :  { %v1310_v46 = vmul.f32 -1.442695, %v734_v44  ;;  %v712_v44 = vadd.f32 %v711_v6, %v1998_v2 }
 0x2d3   :  { %v671_v34 = vpop.f32.mrf.mxu3 }
 0x2d4   :  { %1358 = vpow2.f32 %v1310_v46  ;;  %v672_v9 = vadd.f32 %v671_v34, %v2473_v19 }
 0x2d6   :  { %v714_v43 = vadd.f32 %v672_v9, %v2478_v29  ;;  %v2479_v29 = vld [vmem:[#allocation35_spill] sm:$0xff] }
 0x2d8   :  { %v1309_v39 = vmul.f32 -1.442695, %v714_v43  ;;  %v215_v43 = vadd.f32 %v2479_v29, %v2001_v55 }
 0x2da   :  { %v1359_v61 = vpop.eup %1358  ;;  %1360 = vpow2.f32 %v1309_v39 }
 0x2db   :  { %v738_v12 = vadd.f32 1.0, %v1359_v61 }
 0x2dd   :  { %1362 = vrcp.f32 %v738_v12  ;;  %v750_v39 = vand.u32 2147483648, %v738_v12  ;;  %vm744_vm14 = vweird.f32 %v738_v12 }
 0x2e0   :  { %v1361_v13 = vpop.eup %1360 }
 0x2e1   :  { %v718_v59 = vadd.f32 1.0, %v1361_v13  ;;  %v748_v13 = vand.u32 2147483647, %v738_v12 }
 0x2e3   :  { %1364 = vrcp.f32 %v718_v59  ;;  %v1363_v42 = vpop.eup %1362  ;;  %v730_v10 = vand.u32 2147483648, %v718_v59  ;;  %v728_v14 = vand.u32 2147483647, %v718_v59  ;;  %vm724_vm10 = vweird.f32 %v718_v59 }
 0x2e4   :  { %v740_v37 = vmul.f32 %v1363_v42, %v738_v12  ;;  %vm745_vm13 = vweird.f32 %v1363_v42  ;;  %vm749_vm0 = vcmp.eq.f32.partialorder %v748_v13, 8.507059e+37  ;;  %v1443_v12 = vld [vmem:[#allocation3 + $0x128] sm:$0xff] }
 0x2e5   :  { %v731_v0 = vor.u32 1.1754944e-38, %v730_v10  ;;  %vm729_vm12 = vcmp.eq.f32.partialorder %v728_v14, 8.507059e+37  ;;  %vm746_vm15 = vmor %vm744_vm14, %vm745_vm13 }
 0x2e6   :  { %v741_v7 = vsub.f32 1.0, %v740_v37 }
 0x2e8   :  { %v742_v62 = vmul.f32 %v1363_v42, %v741_v7 }
 0x2e9   :  { %v1365_v3 = vpop.eup %1364 }
 0x2ea   :  { %v720_v5 = vmul.f32 %v1365_v3, %v718_v59  ;;  %vm725_vm9 = vweird.f32 %v1365_v3  ;;  %v743_v9 = vadd.f32 %v1363_v42, %v742_v62  ;;  %v751_v59 = vor.u32 1.1754944e-38, %v750_v39  ;;  %v2481_v62 = vld [vmem:[#allocation26_spill] sm:$0xff] }
 0x2eb   :  { %vm726_vm11 = vmor %vm724_vm10, %vm725_vm9 }
 0x2ec   :  { %v721_v8 = vsub.f32 1.0, %v720_v5  ;;  %v747_v5 = vsel %vm746_vm15, %v1363_v42, %v743_v9 }
 0x2ed   :  { %v752_v7 = vsel %vm749_vm0, %v751_v59, %v747_v5 }
 0x2ee   :  { %v722_v11 = vmul.f32 %v1365_v3, %v721_v8  ;;  %v757_v8 = vsub.f32 1.0, %v752_v7 }
 0x2f0   :  { %v723_v50 = vadd.f32 %v1365_v3, %v722_v11  ;;  %v759_v11 = vmul.f32 %v752_v7, %v2150_v15  ;;  %v1442_v15 = vld [vmem:[#allocation3 + $0x140] sm:$0xff] }
 0x2f2   :  { %v727_v46 = vsel %vm726_vm11, %v1365_v3, %v723_v50 }
 0x2f3   :  { %v732_v34 = vsel %vm729_vm12, %v731_v0, %v727_v46 }
 0x2f4   :  { %v754_v61 = vmul.f32 %v732_v34, %v712_v44 }
 0x2f6   :  { %v755_v37 = vadd.f32 %v754_v61, %v215_v43 }
 0x2f8   :  { %1366 = vtanh.f32 %v755_v37 }
 0x2fe   :  { %v1367_v3 = vpop.eup %1366 }
 0x2ff   :  { %v758_v10 = vmul.f32 %v1367_v3, %v757_v8 }
 0x301   :  { %v2280_v14 = vadd.f32 %v759_v11, %v758_v10 }
 0x303   :  { %783 = vmatmul.f32.vlgmr.msrb.gmra.mxu2 %v2280_v14  ;;  %803 = vmatmul.f32.vlgmr.msra.gmra.mxu3 %v2280_v14 }
 0x304   :  { %823 = vmatmul.f32.vlgmr.msra.gmra.mxu0 %v2280_v14  ;;  %1033 = vmatpush.msrb.mxu2 %v2155_v17 }
 0x305   :  { %1106 = vmatpush.msra.mxu3 %v2158_v18  ;;  %1126 = vmatpush.msra.mxu0 %v2161_v21  ;;  %v1444_v18 = vld [vmem:[#allocation3 + $0x110] sm:$0xff]  ;;  %v1445_v21 = vld [vmem:[#allocation3 + $0xf8] sm:$0xff] }
 0x306   :  { %1034 = vmatpush.msrb.mxu2 %v2164_v31 }
 0x307   :  { %1107 = vmatpush.msra.mxu3 %v2167_v23  ;;  %1127 = vmatpush.msra.mxu0 %v2170_v24  ;;  %v1446_v23 = vld [vmem:[#allocation3 + $0xe0] sm:$0xff]  ;;  %v1447_v24 = vld [vmem:[#allocation3 + $0xc8] sm:$0xff] }
 0x308   :  { %1035 = vmatpush.msrb.mxu2 %v2173_v25 }
 0x309   :  { %1108 = vmatpush.msra.mxu3 %v2176_v26  ;;  %1128 = vmatpush.msra.mxu0 %v1442_v15  ;;  %v1448_v26 = vld [vmem:[#allocation3 + $0xb0] sm:$0xff] }
 0x30a   :  { %1036 = vmatpush.msrb.mxu2 %v2180_v27 }
 0x30b   :  { %1109 = vmatpush.msra.mxu3 %v2183_v28  ;;  %1129 = vmatpush.msra.mxu0 %v1443_v12  ;;  %v1449_v28 = vld [vmem:[#allocation3 + $0x98] sm:$0xff] }
 0x30c   :  { %1037 = vmatpush.msrb.mxu2 %v2187_v30 }
 0x30d   :  { %1110 = vmatpush.msra.mxu3 %v2190_v32  ;;  %1130 = vmatpush.msra.mxu0 %v1444_v18  ;;  %v1450_v32 = vld [vmem:[#allocation3 + $0x80] sm:$0xff] }
 0x30e   :  { %1038 = vmatpush.msrb.mxu2 %v2194_v45 }
 0x30f   :  { %1111 = vmatpush.msra.mxu3 %v2197_v35  ;;  %1131 = vmatpush.msra.mxu0 %v1445_v21  ;;  %v1451_v35 = vld [vmem:[#allocation3 + $0x68] sm:$0xff] }
 0x310   :  { %1039 = vmatpush.msrb.mxu2 %v2201_v47 }
 0x311   :  { %1112 = vmatpush.msra.mxu3 %v2204_v36  ;;  %1132 = vmatpush.msra.mxu0 %v1446_v23  ;;  %v1452_v36 = vld [vmem:[#allocation3 + $0x50] sm:$0xff] }
 0x312   :  { %1040 = vmatpush.msrb.mxu2 %v2208_v48  ;;  %v2482_v23 = vld [vmem:[#allocation37_spill] sm:$0xff] }
 0x313   :  { %1113 = vmatpush.msra.mxu3 %v2211_v38  ;;  %1133 = vmatpush.msra.mxu0 %v1447_v24  ;;  %v1453_v38 = vld [vmem:[#allocation3 + $0x38] sm:$0xff]  ;;  %v218_v24 = vadd.f32 %v2482_v23, %v2001_v55 }
 0x314   :  { %1041 = vmatpush.msrb.mxu2 %v2215_v49 }
 0x315   :  { %1114 = vmatpush.msra.mxu3 %v2218_v40  ;;  %1134 = vmatpush.msra.mxu0 %v1448_v26  ;;  %v1454_v40 = vld [vmem:[#allocation3 + $0x20] sm:$0xff] }
 0x316   :  { %1042 = vmatpush.msrb.mxu2 %v2222_v51 }
 0x317   :  { %1115 = vmatpush.msra.mxu3 %v2225_v58  ;;  %1135 = vmatpush.msra.mxu0 %v1449_v28  ;;  %v1455_v58 = vld [vmem:[#allocation3 + $0x8] sm:$0xff] }
 0x318   :  { %1043 = vmatpush.msrb.mxu2 %v2229_v52 }
 0x319   :  { %1116 = vmatpush.msra.mxu3 %v2232_v4  ;;  %1136 = vmatpush.msra.mxu0 %v1450_v32 }
 0x31a   :  { %1044 = vmatpush.msrb.mxu2 %v2236_v53 }
 0x31b   :  { %1117 = vmatpush.msra.mxu3 %v2239_v33  ;;  %1137 = vmatpush.msra.mxu0 %v1451_v35 }
 0x31c   :  { %1045 = vmatpush.msrb.mxu2 %v2243_v54 }
 0x31d   :  { %1118 = vmatpush.msra.mxu3 %v2246_v41  ;;  %1138 = vmatpush.msra.mxu0 %v1452_v36  ;;  %v2480_v41 = vld [vmem:[#allocation36_spill] sm:$0xff] }
 0x31e   :  { %1046 = vmatpush.msrb.mxu2 %v2250_v56  ;;  %v177_v42 = vadd.f32 %v2480_v41, %v2471_v16 }
 0x31f   :  { %1119 = vmatpush.msra.mxu3 %v2253_v20  ;;  %1139 = vmatpush.msra.mxu0 %v1453_v38 }
 0x320   :  { %1047 = vmatpush.msrb.mxu2 %v2257_v57 }
 0x321   :  { %1120 = vmatpush.msra.mxu3 %v2260_v60  ;;  %1140 = vmatpush.msra.mxu0 %v1454_v40 }
 0x322   :  { %1048 = vmatpush.msrb.mxu2 %v2264_v1 }
 0x323   :  { %1121 = vmatpush.msra.mxu3 %v2267_v63  ;;  %1141 = vmatpush.msra.mxu0 %v1455_v58 }
 0x381   :  { %v824_v8 = vpop.f32.mrf.mxu0 }
 0x382   :  { %v825_v15 = vadd.f32 %v824_v8, %v1998_v2 }
 0x386   :  { %v784_v4 = vpop.f32.mrf.mxu2  ;;  %v804_v33 = vpop.f32.mrf.mxu3 }
 0x387   :  { %v785_v20 = vadd.f32 %v784_v4, %v2473_v19  ;;  %v805_v6 = vadd.f32 %v804_v33, %v2474_v22 }
 0x389   :  { %v827_v50 = vadd.f32 %v785_v20, %v2481_v62  ;;  %v847_v60 = vadd.f32 %v805_v6, %v177_v42 }
 0x38b   :  { %v1311_v0 = vmul.f32 -1.442695, %v827_v50  ;;  %v1312_v44 = vmul.f32 -1.442695, %v847_v60 }
 0x38d   :  { %1368 = vpow2.f32 %v1311_v0 }
 0x38e   :  { %1370 = vpow2.f32 %v1312_v44 }
 0x393   :  { %v1369_v46 = vpop.eup %1368 }
 0x394   :  { %v1371_v63 = vpop.eup %1370  ;;  %v831_v34 = vadd.f32 1.0, %v1369_v46 }
 0x395   :  { %v851_v9 = vadd.f32 1.0, %v1371_v63 }
 0x396   :  { %1372 = vrcp.f32 %v831_v34  ;;  %v843_v37 = vand.u32 2147483648, %v831_v34  ;;  %v841_v7 = vand.u32 2147483647, %v831_v34  ;;  %vm837_vm2 = vweird.f32 %v831_v34 }
 0x397   :  { %1374 = vrcp.f32 %v851_v9  ;;  %v863_v26 = vand.u32 2147483648, %v851_v9  ;;  %vm857_vm6 = vweird.f32 %v851_v9  ;;  %v861_v32 = vand.u32 2147483647, %v851_v9 }
 0x398   :  { %v844_v11 = vor.u32 1.1754944e-38, %v843_v37  ;;  %vm842_vm4 = vcmp.eq.f32.partialorder %v841_v7, 8.507059e+37 }
 0x399   :  { %v864_v38 = vor.u32 1.1754944e-38, %v863_v26  ;;  %vm862_vm8 = vcmp.eq.f32.partialorder %v861_v32, 8.507059e+37 }
 0x39c   :  { %v1373_v29 = vpop.eup %1372 }
 0x39d   :  { %v1375_v43 = vpop.eup %1374  ;;  %v833_v39 = vmul.f32 %v1373_v29, %v831_v34  ;;  %vm838_vm1 = vweird.f32 %v1373_v29 }
 0x39e   :  { %v853_v61 = vmul.f32 %v1375_v43, %v851_v9  ;;  %vm839_vm3 = vmor %vm837_vm2, %vm838_vm1  ;;  %vm858_vm5 = vweird.f32 %v1375_v43 }
 0x39f   :  { %v834_v13 = vsub.f32 1.0, %v833_v39  ;;  %vm859_vm7 = vmor %vm857_vm6, %vm858_vm5 }
 0x3a0   :  { %v854_v5 = vsub.f32 1.0, %v853_v61 }
 0x3a1   :  { %v835_v59 = vmul.f32 %v1373_v29, %v834_v13 }
 0x3a2   :  { %v855_v3 = vmul.f32 %v1375_v43, %v854_v5 }
 0x3a3   :  { %v836_v10 = vadd.f32 %v1373_v29, %v835_v59 }
 0x3a4   :  { %v856_v21 = vadd.f32 %v1375_v43, %v855_v3 }
 0x3a5   :  { %v840_v12 = vsel %vm839_vm3, %v1373_v29, %v836_v10 }
 0x3a6   :  { %v845_v18 = vsel %vm842_vm4, %v844_v11, %v840_v12  ;;  %v860_v36 = vsel %vm859_vm7, %v1375_v43, %v856_v21  ;;  %v2485_v43 = vld [vmem:[#allocation39_spill] sm:$0xff] }
 0x3a7   :  { %v867_v28 = vmul.f32 %v845_v18, %v825_v15  ;;  %v865_v40 = vsel %vm862_vm8, %v864_v38, %v860_v36  ;;  %v221_v39 = vadd.f32 %v2485_v43, %v2001_v55  ;;  %v2487_v38 = vld [vmem:[#allocation28_spill] sm:$0xff] }
 0x3a8   :  { %v870_v58 = vsub.f32 1.0, %v865_v40  ;;  %v872_v41 = vmul.f32 %v865_v40, %v2280_v14 }
 0x3a9   :  { %v868_v35 = vadd.f32 %v867_v28, %v218_v24  ;;  %v2486_v28 = vld [vmem:[#allocation40_spill] sm:$0xff] }
 0x3aa   :  { %v183_v32 = vadd.f32 %v2486_v28, %v2471_v16 }
 0x3ab   :  { %1376 = vtanh.f32 %v868_v35 }
 0x3b1   :  { %v1377_v4 = vpop.eup %1376 }
 0x3b2   :  { %v871_v33 = vmul.f32 %v1377_v4, %v870_v58 }
 0x3b4   :  { %v2328_v42 = vadd.f32 %v872_v41, %v871_v33 }
 0x3b6   :  { %896 = vmatmul.f32.vlgmr.msra.gmra.mxu1 %v2328_v42  ;;  %916 = vmatmul.f32.vlgmr.msra.gmra.mxu2 %v2328_v42 }
 0x3b7   :  { %936 = vmatmul.f32.vlgmr.msrb.gmra.mxu3 %v2328_v42  ;;  %1146 = vmatpush.msra.mxu1 %v2155_v17 }
 0x3b9   :  { %1147 = vmatpush.msra.mxu1 %v2164_v31 }
 0x3bb   :  { %1148 = vmatpush.msra.mxu1 %v2173_v25  ;;  %v2483_v25 = vld [vmem:[#allocation27_spill] sm:$0xff] }
 0x3bd   :  { %1149 = vmatpush.msra.mxu1 %v2180_v27 }
 0x3bf   :  { %1150 = vmatpush.msra.mxu1 %v2187_v30 }
 0x3c1   :  { %1151 = vmatpush.msra.mxu1 %v2194_v45 }
 0x3c3   :  { %1152 = vmatpush.msra.mxu1 %v2201_v47  ;;  %v2484_v47 = vld [vmem:[#allocation38_spill] sm:$0xff] }
 0x3c5   :  { %1153 = vmatpush.msra.mxu1 %v2208_v48  ;;  %v180_v48 = vadd.f32 %v2484_v47, %v2471_v16 }
 0x3c7   :  { %1154 = vmatpush.msra.mxu1 %v2215_v49 }
 0x3c9   :  { %1155 = vmatpush.msra.mxu1 %v2222_v51 }
 0x3cb   :  { %1156 = vmatpush.msra.mxu1 %v2229_v52 }
 0x3cd   :  { %1157 = vmatpush.msra.mxu1 %v2236_v53 }
 0x3cf   :  { %1158 = vmatpush.msra.mxu1 %v2243_v54 }
 0x3d1   :  { %1159 = vmatpush.msra.mxu1 %v2250_v56 }
 0x3d3   :  { %1160 = vmatpush.msra.mxu1 %v2257_v57 }
 0x3d5   :  { %1161 = vmatpush.msra.mxu1 %v2264_v1 }
 0x433   :  { %v897_v17 = vpop.f32.mrf.mxu1 }
 0x434   :  { %v898_v31 = vadd.f32 %v897_v17, %v2473_v19 }
 0x436   :  { %v940_v27 = vadd.f32 %v898_v31, %v2483_v25 }
 0x438   :  { %v1313_v30 = vmul.f32 -1.442695, %v940_v27 }
 0x439   :  { %v917_v45 = vpop.f32.mrf.mxu2 }
 0x43a   :  { %1378 = vpow2.f32 %v1313_v30  ;;  %v918_v49 = vadd.f32 %v917_v45, %v2474_v22  ;;  %v937_v0 = vpop.f32.mrf.mxu3 }
 0x43b   :  { %v938_v9 = vadd.f32 %v937_v0, %v1998_v2 }
 0x43c   :  { %v960_v51 = vadd.f32 %v918_v49, %v180_v48 }
 0x43e   :  { %v1314_v52 = vmul.f32 -1.442695, %v960_v51 }
 0x440   :  { %v1379_v53 = vpop.eup %1378  ;;  %1380 = vpow2.f32 %v1314_v52 }
 0x441   :  { %v944_v54 = vadd.f32 1.0, %v1379_v53 }
 0x443   :  { %1382 = vrcp.f32 %v944_v54  ;;  %v956_v6 = vand.u32 2147483648, %v944_v54  ;;  %v954_v50 = vand.u32 2147483647, %v944_v54  ;;  %vm950_vm10 = vweird.f32 %v944_v54 }
 0x445   :  { %v957_v63 = vor.u32 1.1754944e-38, %v956_v6  ;;  %vm955_vm12 = vcmp.eq.f32.partialorder %v954_v50, 8.507059e+37 }
 0x446   :  { %v1381_v56 = vpop.eup %1380 }
 0x447   :  { %v964_v57 = vadd.f32 1.0, %v1381_v56 }
 0x449   :  { %v1383_v1 = vpop.eup %1382  ;;  %1384 = vrcp.f32 %v964_v57  ;;  %v976_v5 = vand.u32 2147483648, %v964_v57  ;;  %v974_v59 = vand.u32 2147483647, %v964_v57  ;;  %vm970_vm14 = vweird.f32 %v964_v57 }
 0x44a   :  { %v946_v14 = vmul.f32 %v1383_v1, %v944_v54  ;;  %vm951_vm9 = vweird.f32 %v1383_v1 }
 0x44b   :  { %vm952_vm11 = vmor %vm950_vm10, %vm951_vm9  ;;  %v977_v10 = vor.u32 1.1754944e-38, %v976_v5  ;;  %vm975_vm0 = vcmp.eq.f32.partialorder %v974_v59, 8.507059e+37  ;;  %v1227_v5 = vld [vmem:[#allocation6 + $0x70] sm:$0xff]  ;;  %v1226_v59 = vld [vmem:[#allocation6 + $0x68] sm:$0xff] }
 0x44c   :  { %v947_v20 = vsub.f32 1.0, %v946_v14 }
 0x44e   :  { %v948_v62 = vmul.f32 %v1383_v1, %v947_v20 }
 0x44f   :  { %v1385_v60 = vpop.eup %1384 }
 0x450   :  { %v966_v44 = vmul.f32 %v1385_v60, %v964_v57  ;;  %v949_v46 = vadd.f32 %v1383_v1, %v948_v62  ;;  %vm971_vm13 = vweird.f32 %v1385_v60  ;;  %v2488_v62 = vld [vmem:[#allocation41_spill] sm:$0xff] }
 0x451   :  { %vm972_vm15 = vmor %vm970_vm14, %vm971_vm13  ;;  %v224_v50 = vadd.f32 %v2488_v62, %v2001_v55  ;;  %v2491_v62 = vld [vmem:[#allocation43_spill] sm:$0xff] }
 0x452   :  { %v967_v34 = vsub.f32 1.0, %v966_v44  ;;  %v953_v29 = vsel %vm952_vm11, %v1383_v1, %v949_v46 }
 0x453   :  { %v958_v61 = vsel %vm955_vm12, %v957_v63, %v953_v29 }
 0x454   :  { %v980_v13 = vmul.f32 %v958_v61, %v938_v9  ;;  %v968_v37 = vmul.f32 %v1385_v60, %v967_v34 }
 0x456   :  { %v981_v7 = vadd.f32 %v980_v13, %v221_v39  ;;  %v969_v8 = vadd.f32 %v1385_v60, %v968_v37  ;;  %v1228_v37 = vld [vmem:[#allocation6 + $0x78] sm:$0xff] }
 0x457   :  { %1233 = vmatpush.msra.mxu2 %v1228_v37 }
 0x458   :  { %1386 = vtanh.f32 %v981_v7  ;;  %v973_v3 = vsel %vm972_vm15, %v1385_v60, %v969_v8  ;;  %v1225_v7 = vld [vmem:[#allocation6 + $0x60] sm:$0xff]  ;;  %v1224_v8 = vld [vmem:[#allocation6 + $0x58] sm:$0xff] }
 0x459   :  { %v978_v11 = vsel %vm975_vm0, %v977_v10, %v973_v3  ;;  %1234 = vmatpush.msra.mxu2 %v1227_v5  ;;  %v2489_v10 = vld [vmem:[#allocation42_spill] sm:$0xff] }
 0x45a   :  { %v983_v15 = vsub.f32 1.0, %v978_v11  ;;  %v985_v21 = vmul.f32 %v978_v11, %v2328_v42  ;;  %v186_v11 = vadd.f32 %v2489_v10, %v2471_v16  ;;  %v1218_v16 = vld [vmem:[#allocation6 + $0x28] sm:$0xff] }
 0x45b   :  { %1235 = vmatpush.msra.mxu2 %v1226_v59 }
 0x45d   :  { %1236 = vmatpush.msra.mxu2 %v1225_v7 }
 0x45e   :  { %v1387_v12 = vpop.eup %1386 }
 0x45f   :  { %v984_v18 = vmul.f32 %v1387_v12, %v983_v15  ;;  %1237 = vmatpush.msra.mxu2 %v1224_v8  ;;  %v1223_v12 = vld [vmem:[#allocation6 + $0x50] sm:$0xff] }
 0x461   :  { %v986_v23 = vadd.f32 %v985_v21, %v984_v18  ;;  %1238 = vmatpush.msra.mxu2 %v1223_v12  ;;  %v1222_v21 = vld [vmem:[#allocation6 + $0x48] sm:$0xff] }
 0x463   :  { %1009 = vmatmul.f32.vlgmr.msrb.gmra.mxu0 %v986_v23  ;;  %1029 = vmatmul.f32.vlgmr.msrb.gmra.mxu1 %v986_v23 }
 0x464   :  { %1049 = vmatmul.f32.vlgmr.msrb.gmra.mxu2 %v986_v23 }
 0x465   :  { %1239 = vmatpush.msra.mxu2 %v1222_v21 }
 0x4e0   :  { %v1010_v24 = vpop.f32.mrf.mxu0  ;;  %v1030_v26 = vpop.f32.mrf.mxu1 }
 0x4e1   :  { %v1011_v35 = vadd.f32 %v1010_v24, %v2473_v19  ;;  %v1031_v36 = vadd.f32 %v1030_v26, %v2474_v22  ;;  %v1221_v24 = vld [vmem:[#allocation6 + $0x40] sm:$0xff]  ;;  %v1220_v26 = vld [vmem:[#allocation6 + $0x38] sm:$0xff] }
 0x4e2   :  { %1240 = vmatpush.msra.mxu2 %v1221_v24 }
 0x4e3   :  { %v1053_v40 = vadd.f32 %v1011_v35, %v2487_v38  ;;  %v1073_v58 = vadd.f32 %v1031_v36, %v183_v32  ;;  %v1219_v35 = vld [vmem:[#allocation6 + $0x30] sm:$0xff] }
 0x4e4   :  { %1241 = vmatpush.msra.mxu2 %v1220_v26  ;;  %v2490_v36 = vld [vmem:[#allocation29_spill] sm:$0xff] }
 0x4e5   :  { %v1315_v4 = vmul.f32 -1.442695, %v1053_v40  ;;  %v1316_v33 = vmul.f32 -1.442695, %v1073_v58  ;;  %v1217_v40 = vld [vmem:[#allocation6 + $0x20] sm:$0xff] }
 0x4e6   :  { %1242 = vmatpush.msra.mxu2 %v1219_v35 }
 0x4e7   :  { %1388 = vpow2.f32 %v1315_v4  ;;  %v1050_v53 = vpop.f32.mrf.mxu2  ;;  %v1216_v4 = vld [vmem:[#allocation6 + $0x18] sm:$0xff] }
 0x4e8   :  { %1390 = vpow2.f32 %v1316_v33  ;;  %v1051_v1 = vadd.f32 %v1050_v53, %v1998_v2  ;;  %1243 = vmatpush.msra.mxu2 %v1218_v16 }
 0x4ea   :  { %1244 = vmatpush.msra.mxu2 %v1217_v40 }
 0x4ec   :  { %1245 = vmatpush.msra.mxu2 %v1216_v4 }
 0x4ed   :  { %v1389_v41 = vpop.eup %1388 }
 0x4ee   :  { %v1391_v42 = vpop.eup %1390  ;;  %v1057_v17 = vadd.f32 1.0, %v1389_v41  ;;  %v1215_v41 = vld [vmem:[#allocation6 + $0x10] sm:$0xff] }
 0x4ef   :  { %v1077_v31 = vadd.f32 1.0, %v1391_v42  ;;  %v1214_v42 = vld [vmem:[#allocation6 + $0x8] sm:$0xff]  ;;  %1246 = vmatpush.msra.mxu2 %v1215_v41 }
 0x4f0   :  { %1392 = vrcp.f32 %v1057_v17  ;;  %v1069_v49 = vand.u32 2147483648, %v1057_v17  ;;  %v1067_v52 = vand.u32 2147483647, %v1057_v17  ;;  %vm1063_vm2 = vweird.f32 %v1057_v17 }
 0x4f1   :  { %1394 = vrcp.f32 %v1077_v31  ;;  %v1089_v0 = vand.u32 2147483648, %v1077_v31  ;;  %vm1083_vm6 = vweird.f32 %v1077_v31  ;;  %v1087_v44 = vand.u32 2147483647, %v1077_v31  ;;  %1247 = vmatpush.msra.mxu2 %v1214_v42 }
 0x4f2   :  { %v1070_v57 = vor.u32 1.1754944e-38, %v1069_v49  ;;  %vm1068_vm4 = vcmp.eq.f32.partialorder %v1067_v52, 8.507059e+37 }
 0x4f3   :  { %v1090_v34 = vor.u32 1.1754944e-38, %v1089_v0  ;;  %vm1088_vm8 = vcmp.eq.f32.partialorder %v1087_v44, 8.507059e+37 }
 0x4f6   :  { %v1393_v25 = vpop.eup %1392 }
 0x4f7   :  { %v1395_v27 = vpop.eup %1394  ;;  %v1059_v30 = vmul.f32 %v1393_v25, %v1057_v17  ;;  %vm1064_vm1 = vweird.f32 %v1393_v25  ;;  %v1213_v17 = vld [vmem:[#allocation6] sm:$0xff] }
 0x4f8   :  { %v1079_v45 = vmul.f32 %v1395_v27, %v1077_v31  ;;  %vm1065_vm3 = vmor %vm1063_vm2, %vm1064_vm1  ;;  %vm1084_vm5 = vweird.f32 %v1395_v27  ;;  %1248 = vmatpush.msra.mxu2 %v1213_v17 }
 0x4f9   :  { %v1060_v47 = vsub.f32 1.0, %v1059_v30  ;;  %vm1085_vm7 = vmor %vm1083_vm6, %vm1084_vm5 }
 0x4fa   :  { %v1080_v48 = vsub.f32 1.0, %v1079_v45 }
 0x4fb   :  { %v1061_v51 = vmul.f32 %v1393_v25, %v1060_v47 }
 0x4fc   :  { %v1081_v54 = vmul.f32 %v1395_v27, %v1080_v48 }
 0x4fd   :  { %v1062_v56 = vadd.f32 %v1393_v25, %v1061_v51 }
 0x4fe   :  { %v1082_v6 = vadd.f32 %v1395_v27, %v1081_v54 }
 0x4ff   :  { %v1066_v14 = vsel %vm1065_vm3, %v1393_v25, %v1062_v56 }
 0x500   :  { %v1071_v20 = vsel %vm1068_vm4, %v1070_v57, %v1066_v14  ;;  %v1086_v63 = vsel %vm1085_vm7, %v1395_v27, %v1082_v6 }
 0x501   :  { %v1093_v60 = vmul.f32 %v1071_v20, %v1051_v1  ;;  %v1091_v9 = vsel %vm1088_vm8, %v1090_v34, %v1086_v63 }
 0x502   :  { %v1096_v29 = vsub.f32 1.0, %v1091_v9  ;;  %v1098_v61 = vmul.f32 %v1091_v9, %v986_v23 }
 0x503   :  { %v1094_v46 = vadd.f32 %v1093_v60, %v224_v50  ;;  %v227_v50 = vadd.f32 %v2491_v62, %v2001_v55  ;;  %v1327_v55 = vld [vmem:[%s2392_s6] ss:$0 sm:$0xff] }
 0x505   :  { %1396 = vtanh.f32 %v1094_v46 }
 0x50b   :  { %v1397_v43 = vpop.eup %1396 }
 0x50c   :  { %v1097_v39 = vmul.f32 %v1397_v43, %v1096_v29 }
 0x50e   :  { %v2366_v13 = vadd.f32 %v1098_v61, %v1097_v39 }
 0x510   :  { %1122 = vmatmul.f32.vlgmr.msra.gmra.mxu3 %v2366_v13  ;;  %1142 = vmatmul.f32.vlgmr.msra.gmra.mxu0 %v2366_v13 }
 0x511   :  { %1162 = vmatmul.f32.vlgmr.msra.gmra.mxu1 %v2366_v13 }
 0x58d   :  { %v1143_v3 = vpop.f32.mrf.mxu0 }
 0x58e   :  { %v1144_v15 = vadd.f32 %v1143_v3, %v2474_v22  ;;  %v1163_v53 = vpop.f32.mrf.mxu1 }
 0x58f   :  { %v1164_v1 = vadd.f32 %v1163_v53, %v1998_v2 }
 0x590   :  { %v1186_v18 = vadd.f32 %v1144_v15, %v186_v11 }
 0x592   :  { %v1318_v23 = vmul.f32 -1.442695, %v1186_v18 }
 0x593   :  { %v1123_v28 = vpop.f32.mrf.mxu3 }
 0x594   :  { %1398 = vpow2.f32 %v1318_v23  ;;  %v1124_v32 = vadd.f32 %v1123_v28, %v2473_v19 }
 0x596   :  { %v1166_v38 = vadd.f32 %v1124_v32, %v2490_v36 }
 0x598   :  { %v1317_v22 = vmul.f32 -1.442695, %v1166_v38 }
 0x59a   :  { %v1399_v58 = vpop.eup %1398  ;;  %1400 = vpow2.f32 %v1317_v22 }
 0x59b   :  { %v1190_v33 = vadd.f32 1.0, %v1399_v58 }
 0x59d   :  { %1402 = vrcp.f32 %v1190_v33  ;;  %v1202_v60 = vand.u32 2147483648, %v1190_v33  ;;  %vm1196_vm14 = vweird.f32 %v1190_v33  ;;  %v1200_v44 = vand.u32 2147483647, %v1190_v33 }
 0x59f   :  { %v1203_v34 = vor.u32 1.1754944e-38, %v1202_v60  ;;  %vm1201_vm0 = vcmp.eq.f32.partialorder %v1200_v44, 8.507059e+37 }
 0x5a0   :  { %v1401_v19 = vpop.eup %1400 }
 0x5a1   :  { %v1170_v31 = vadd.f32 1.0, %v1401_v19 }
 0x5a3   :  { %1404 = vrcp.f32 %v1170_v31  ;;  %v1403_v25 = vpop.eup %1402  ;;  %v1182_v49 = vand.u32 2147483648, %v1170_v31  ;;  %v1180_v52 = vand.u32 2147483647, %v1170_v31  ;;  %vm1176_vm10 = vweird.f32 %v1170_v31 }
 0x5a4   :  { %v1192_v27 = vmul.f32 %v1403_v25, %v1190_v33  ;;  %vm1197_vm13 = vweird.f32 %v1403_v25 }
 0x5a5   :  { %v1183_v57 = vor.u32 1.1754944e-38, %v1182_v49  ;;  %vm1181_vm12 = vcmp.eq.f32.partialorder %v1180_v52, 8.507059e+37  ;;  %vm1198_vm15 = vmor %vm1196_vm14, %vm1197_vm13 }
 0x5a6   :  { %v1193_v47 = vsub.f32 1.0, %v1192_v27 }
 0x5a8   :  { %v1194_v54 = vmul.f32 %v1403_v25, %v1193_v47 }
 0x5a9   :  { %v1405_v30 = vpop.eup %1404 }
 0x5aa   :  { %v1172_v45 = vmul.f32 %v1405_v30, %v1170_v31  ;;  %vm1177_vm9 = vweird.f32 %v1405_v30  ;;  %v1195_v6 = vadd.f32 %v1403_v25, %v1194_v54 }
 0x5ab   :  { %vm1178_vm11 = vmor %vm1176_vm10, %vm1177_vm9 }
 0x5ac   :  { %v1173_v48 = vsub.f32 1.0, %v1172_v45  ;;  %v1199_v63 = vsel %vm1198_vm15, %v1403_v25, %v1195_v6 }
 0x5ad   :  { %v1204_v9 = vsel %vm1201_vm0, %v1203_v34, %v1199_v63 }
 0x5ae   :  { %v1174_v51 = vmul.f32 %v1405_v30, %v1173_v48  ;;  %v1209_v2 = vsub.f32 1.0, %v1204_v9  ;;  %v1211_v39 = vmul.f32 %v1204_v9, %v2366_v13 }
 0x5b0   :  { %v1175_v56 = vadd.f32 %v1405_v30, %v1174_v51 }
 0x5b2   :  { %v1179_v14 = vsel %vm1178_vm11, %v1405_v30, %v1175_v56 }
 0x5b3   :  { %v1184_v20 = vsel %vm1181_vm12, %v1183_v57, %v1179_v14 }
 0x5b4   :  { %v1206_v0 = vmul.f32 %v1184_v20, %v1164_v1 }
 0x5b6   :  { %v1207_v46 = vadd.f32 %v1206_v0, %v227_v50 }
 0x5b8   :  { %1406 = vtanh.f32 %v1207_v46 }
 0x5be   :  { %v1407_v29 = vpop.eup %1406 }
 0x5bf   :  { %v1210_v43 = vmul.f32 %v1407_v29, %v1209_v2 }
 0x5c1   :  { %v1212_v61 = vadd.f32 %v1211_v39, %v1210_v43 }
 0x5c3   :  { %1249 = vmatmul.f32.vlgmr.msra.gmra.mxu2 %v1212_v61 }
 0x646   :  { %v1250_v37 = vpop.f32.mrf.mxu2 }
 0x647   :  { %v1251_v5 = vadd.f32 %v1327_v55, %v1250_v37 }
 0x649   :  { %1253 = vst [vmem:[#allocation8] sm:$0xff] %v1251_v5 }
 0x64a   :  { %1264 = dma.vmem_to_hbm [thread:$0]  %s1260_s19, 128, %s1262_s22, [#allocation5]  }
 0x64b   :  { %1532 = dma.done.wait [#allocation5], 128  }
 0x64c   :  { %1533 = vsyncadd [#allocation5], 4294967168 }
 0x64d   :  { %1269 = vsyncpa [#allocation4], 1 }
 0x64e   :  { %1270 = vsyncpa [#allocation7], 1 }
 0x64f   :  { %1271 = vsyncpa [#allocation5], 1 }

</bundles_post_ra>
